<compile_context>
chip_gen: v6e
topology: v6e:2x2x1
jax: 0.10.0
libtpu: 0.0.40
codegen_flags: <defaults>
</compile_context>

<pallas_src>
import functools
import math

import jax
import jax.numpy as jnp
from jax.experimental import pallas as pl
from jax.experimental.pallas import tpu as pltpu


def _mha_kernel(x_ref, bias_ref, wqkv_ref, bqkv_ref, wo_ref, bo_ref, out_ref,
                qkv_ref, ctx_ref, *, batch_block, seq_len, num_heads, head_dim):
    TB, S = batch_block, seq_len
    E = num_heads * head_dim

    # Fused Q/K/V projection for all heads and all TB sequences in this block:
    # one big bf16 MXU matmul with f32 accumulation.
    x = x_ref[...].reshape(TB * S, E)                        # bf16, leading-dim merge
    qkv = jnp.dot(x, wqkv_ref[...],
                  preferred_element_type=jnp.float32)        # (TB*S, 3E) f32
    qkv = qkv + bqkv_ref[...]                                # + (1, 3E) bias (f32)
    # Stage in a bf16 VMEM scratch; per-head slices below are cheap ref loads.
    qkv_ref[...] = qkv.astype(qkv_ref.dtype)

    for b in range(TB):
        r0 = b * S
        # Hoist the (1,S)->(S,S) mask-bias broadcast out of the unrolled head loop.
        bias_b = jnp.broadcast_to(bias_ref[b], (S, S))       # (S, S) f32
        for h in range(num_heads):
            lo = h * head_dim
            q = qkv_ref[r0:r0 + S, lo:lo + head_dim]                  # (S,Dh) bf16
            k = qkv_ref[r0:r0 + S, E + lo:E + lo + head_dim]          # (S,Dh) bf16
            v = qkv_ref[r0:r0 + S, 2 * E + lo:2 * E + lo + head_dim]  # (S,Dh) bf16

            # q @ k^T via dot_general on the last dims (no explicit transpose).
            # The 1/sqrt(Dh) scale is pre-folded into the Q columns of Wqkv.
            s = jax.lax.dot_general(q, k, (((1,), (1,)), ((), ())),
                                    preferred_element_type=jnp.float32)
            s = s + bias_b                                   # masked positions -> -1e9
            s = s - jnp.max(s, axis=-1, keepdims=True)
            p = jnp.exp(s)
            p = p * pl.reciprocal(jnp.sum(p, axis=-1, keepdims=True), approx=True)

            ctx_h = jnp.dot(p.astype(v.dtype), v,
                            preferred_element_type=jnp.float32)        # (S,Dh) f32
            # Store each head's context at a static column offset in the VMEM
            # scratch (replaces jnp.concatenate lane relayout).
            ctx_ref[r0:r0 + S, lo:lo + head_dim] = ctx_h.astype(ctx_ref.dtype)

    # Fused output projection over all heads / all TB sequences: one matmul.
    out = jnp.dot(ctx_ref[...], wo_ref[...],
                  preferred_element_type=jnp.float32) + bo_ref[...]
    out_ref[...] = out.reshape(TB, S, E).astype(out_ref.dtype)


def prepare_params(wq, bq, wk, bk, wv, bv, wo_t, bo, compute_dtype=jnp.bfloat16):
    """One-time weight re-layout (call once per weight update, not per forward).

    wq/wk/wv: (H, E, Dh); bq/bk/bv: (H, Dh); wo_t: (H, Dh, E); bo: (E,).
    Returns (wqkv (E,3E), bqkv (1,3E), wo (E,E), bo (1,E)); the 1/sqrt(Dh)
    attention scale is folded into the Q columns and Q bias.
    """
    H, E, Dh = wq.shape
    scale = jnp.float32(1.0 / math.sqrt(Dh))
    wq_s, bq_s = wq * scale, bq * scale
    wqkv = jnp.concatenate(
        [jnp.transpose(w, (1, 0, 2)).reshape(E, H * Dh) for w in (wq_s, wk, wv)],
        axis=-1).astype(compute_dtype)                       # (E, 3E)
    bqkv = jnp.concatenate(
        [b.reshape(H * Dh) for b in (bq_s, bk, bv)]).reshape(1, 3 * H * Dh)
    bqkv = bqkv.astype(jnp.float32)                          # (1, 3E)
    wo = wo_t.reshape(H * Dh, E).astype(compute_dtype)       # (E, E)
    bo2 = bo.reshape(1, E).astype(jnp.float32)               # (1, E)
    return wqkv, bqkv, wo, bo2


def _default_vmem_limit_bytes():
    try:
        cap = pltpu.get_tpu_info().vmem_capacity_bytes
    except Exception:
        cap = 64 * 1024 * 1024
    # ~96 MiB on 128 MiB parts (v5e/v6e), ~48 MiB on 64 MiB parts (v7x),
    # leaving headroom for compiler-internal scratch.
    return min(int(cap * 3 // 4), 100 * 1024 * 1024)


def _pick_batch_block(B, S, E, bytes_per_elem=2, target_bytes=1 << 20):
    """Block enough batch rows per grid step to amortize per-step overhead."""
    per_batch = max(1, S * E * bytes_per_elem)
    tb = max(1, min(B, target_bytes // per_batch))
    while B % tb:
        tb -= 1
    return tb


def _build_mha_call(B, S, E, H, Dh, TB, out_dtype, vmem_limit_bytes,
                    single_buffer_weights):
    kernel = functools.partial(_mha_kernel, batch_block=TB, seq_len=S,
                               num_heads=H, head_dim=Dh)
    batch_map = lambda i: (i, 0, 0)
    const2 = lambda i: (0, 0)
    # Constant index_map => the weights never change across the grid; a single
    # buffer halves their resident VMEM footprint.
    wkw = dict(pipeline_mode=pl.Buffered(1)) if single_buffer_weights else {}

    return pl.pallas_call(
        kernel,
        out_shape=jax.ShapeDtypeStruct((B, S, E), out_dtype),
        grid_spec=pltpu.PrefetchScalarGridSpec(
            num_scalar_prefetch=0,
            grid=(B // TB,),
            in_specs=[
                pl.BlockSpec((TB, S, E), batch_map),            # x (bf16)
                pl.BlockSpec((TB, 1, S), batch_map),            # additive mask bias
                pl.BlockSpec((E, 3 * E), const2, **wkw),        # fused Wqkv (resident)
                pl.BlockSpec((1, 3 * E), const2, **wkw),        # fused bqkv
                pl.BlockSpec((E, E), const2, **wkw),            # Wo (resident)
                pl.BlockSpec((1, E), const2, **wkw),            # bo
            ],
            out_specs=pl.BlockSpec((TB, S, E), batch_map),
            scratch_shapes=[
                pltpu.VMEM((TB * S, 3 * E), jnp.bfloat16),      # staged QKV
                pltpu.VMEM((TB * S, E), jnp.bfloat16),          # per-head context
            ],
        ),
        compiler_params=pltpu.CompilerParams(
            dimension_semantics=("parallel",),
            vmem_limit_bytes=vmem_limit_bytes),
    )


def masked_multi_head_attention(x, mask, params, *, num_heads,
                                batch_block=None, out_dtype=jnp.float32):
    """x: (B,S,E) f32; mask: (B,S); params from prepare_params(). -> (B,S,E)."""
    wqkv, bqkv, wo, bo2 = params
    B, S, E = x.shape
    H = num_heads
    Dh = E // H
    assert wqkv.shape == (E, 3 * E)

    x_c = x.astype(wqkv.dtype)
    # Additive mask bias: 0 where mask != 0, -1e9 where mask == 0.
    mask_bias = ((mask != 0).astype(jnp.float32) - 1.0) * jnp.float32(1e9)
    mask_bias = mask_bias.reshape(B, 1, S)

    TB = batch_block if batch_block is not None else _pick_batch_block(B, S, E)
    vmem_limit = _default_vmem_limit_bytes()
    args = (x_c, mask_bias, wqkv, bqkv, wo, bo2)

    try:
        return _build_mha_call(B, S, E, H, Dh, TB, out_dtype, vmem_limit,
                               single_buffer_weights=True)(*args)
    except Exception:
        # pipeline_mode=pl.Buffered(1) not supported by this JAX/Mosaic build;
        # fall back to default double-buffered weight blocks.
        return _build_mha_call(B, S, E, H, Dh, TB, out_dtype, vmem_limit,
                               single_buffer_weights=False)(*args)


def reference(x, mask, wq, bq, wk, bk, wv, bv, wo_t, bo):
    """Pure-JAX f32 mirror of the torch module for correctness checking."""
    H, _, Dh = wq.shape
    out = jnp.zeros(x.shape[:2] + (bo.shape[0],), jnp.float32)
    for h in range(H):
        q = x @ wq[h] + bq[h]
        k = x @ wk[h] + bk[h]
        v = x @ wv[h] + bv[h]
        s = (q @ jnp.swapaxes(k, -1, -2)) / jnp.sqrt(jnp.float32(Dh))
        s = jnp.where(mask[:, None, :] == 0, jnp.float32(-1000000000.0), s)
        p = jax.nn.softmax(s, axis=-1)
        out = out + (p @ v) @ wo_t[h]
    return out + bo


if __name__ == "__main__":
    B, S, E, H = 2, 8, 32, 4
    Dh = E // H

    key = jax.random.PRNGKey(0)
    ks = jax.random.split(key, 10)

    scale_in = 1.0 / math.sqrt(E)
    scale_out = 1.0 / math.sqrt(H * Dh)

    x = jax.random.normal(ks[0], (B, S, E), jnp.float32)
    # Padding-style mask: last two positions of batch 1 masked out.
    mask = jnp.ones((B, S), jnp.float32).at[1, S - 2:].set(0.0)

    wq = jax.random.uniform(ks[1], (H, E, Dh), jnp.float32, -scale_in, scale_in)
    bq = jax.random.uniform(ks[2], (H, Dh), jnp.float32, -scale_in, scale_in)
    wk = jax.random.uniform(ks[3], (H, E, Dh), jnp.float32, -scale_in, scale_in)
    bk = jax.random.uniform(ks[4], (H, Dh), jnp.float32, -scale_in, scale_in)
    wv = jax.random.uniform(ks[5], (H, E, Dh), jnp.float32, -scale_in, scale_in)
    bv = jax.random.uniform(ks[6], (H, Dh), jnp.float32, -scale_in, scale_in)
    # Output Linear(H*Dh, E): weight W is (E, H*Dh); store W^T split per head.
    wo_t = jax.random.uniform(ks[7], (H, Dh, E), jnp.float32, -scale_out, scale_out)
    bo = jax.random.uniform(ks[8], (E,), jnp.float32, -scale_out, scale_out)

    # One-time weight re-layout (per weight update, not per forward call).
    params = prepare_params(wq, bq, wk, bk, wv, bv, wo_t, bo)

    out = masked_multi_head_attention(x, mask, params, num_heads=H)
    out = jax.block_until_ready(out)

    ref = reference(x, mask, wq, bq, wk, bk, wv, bv, wo_t, bo)
    assert out.shape == (B, S, E)
    # bf16 matmul operands + approx reciprocal -> loose-but-meaningful tolerance.
    assert jnp.allclose(out, ref, atol=5e-2, rtol=5e-2), (
        f"max abs err {jnp.max(jnp.abs(out - ref))}")

    print("KERNEL_OK")
</pallas_src>

<mosaic_0001>
module attributes {stable_mosaic.version = 11 : i64} {
  func.func @_mha_kernel(%arg0: i32, %arg1: memref<2x8x32xbf16, #tpu.memory_space<vmem>>, %arg2: memref<2x1x8xf32, #tpu.memory_space<vmem>>, %arg3: memref<32x96xbf16, #tpu.memory_space<vmem>>, %arg4: memref<1x96xf32, #tpu.memory_space<vmem>>, %arg5: memref<32x32xbf16, #tpu.memory_space<vmem>>, %arg6: memref<1x32xf32, #tpu.memory_space<vmem>>, %arg7: memref<2x8x32xf32, #tpu.memory_space<vmem>>, %arg8: memref<16x96xbf16, #tpu.memory_space<vmem>>, %arg9: memref<16x32xbf16, #tpu.memory_space<vmem>>) attributes {dimension_semantics = [#tpu.dimension_semantics<parallel>], iteration_bounds = array<i64: 1>, scalar_prefetch = 0 : i64, scratch_operands = 2 : i64, tpu.core_type = #tpu.core_type<tc>, window_params = [{transform_indices = @transform_0, window_bounds = array<i64: 2, 8, 32>}, {transform_indices = @transform_1, window_bounds = array<i64: 2, 1, 8>}, {pipeline_mode = #tpu.pipeline_mode<synchronous>, transform_indices = @transform_2, window_bounds = array<i64: 32, 96>}, {pipeline_mode = #tpu.pipeline_mode<synchronous>, transform_indices = @transform_3, window_bounds = array<i64: 1, 96>}, {pipeline_mode = #tpu.pipeline_mode<synchronous>, transform_indices = @transform_4, window_bounds = array<i64: 32, 32>}, {pipeline_mode = #tpu.pipeline_mode<synchronous>, transform_indices = @transform_5, window_bounds = array<i64: 1, 32>}, {transform_indices = @transform_6, window_bounds = array<i64: 2, 8, 32>}]} {
    %c0 = arith.constant 0 : index
    %c0_0 = arith.constant 0 : index
    %c0_1 = arith.constant 0 : index
    %0 = vector.load %arg1[%c0, %c0_0, %c0_1] : memref<2x8x32xbf16, #tpu.memory_space<vmem>>, vector<2x8x32xbf16>
    %1 = vector.shape_cast %0 : vector<2x8x32xbf16> to vector<16x32xbf16>
    %c0_2 = arith.constant 0 : index
    %c0_3 = arith.constant 0 : index
    %2 = vector.load %arg3[%c0_2, %c0_3] : memref<32x96xbf16, #tpu.memory_space<vmem>>, vector<32x96xbf16>
    %cst = arith.constant dense<0.000000e+00> : vector<16x96xf32>
    %3 = tpu.matmul %1, %2, %cst {dimension_numbers = #tpu.dot_dimension_numbers<[1], [0], [0], [1], [0, 0, 1, 1], [], []>} : vector<16x32xbf16>, vector<32x96xbf16>, vector<16x96xf32> -> vector<16x96xf32>
    %c0_4 = arith.constant 0 : index
    %c0_5 = arith.constant 0 : index
    %4 = vector.load %arg4[%c0_4, %c0_5] : memref<1x96xf32, #tpu.memory_space<vmem>>, vector<1x96xf32>
    %5 = vector.broadcast %4 : vector<1x96xf32> to vector<16x96xf32>
    %6 = arith.addf %3, %5 : vector<16x96xf32>
    %7 = arith.truncf %6 : vector<16x96xf32> to vector<16x96xbf16>
    %c0_6 = arith.constant 0 : index
    %c0_7 = arith.constant 0 : index
    %8 = vector.load %arg8[%c0_6, %c0_7] : memref<16x96xbf16, #tpu.memory_space<vmem>>, vector<16x96xbf16>
    tpu.vector_store %arg8[%c0_6, %c0_7], %7 {strides = array<i32>} : memref<16x96xbf16, #tpu.memory_space<vmem>>, vector<16x96xbf16>,
    %c0_8 = arith.constant 0 : index
    %c0_9 = arith.constant 0 : index
    %c0_10 = arith.constant 0 : index
    %9 = vector.load %arg2[%c0_8, %c0_9, %c0_10] : memref<2x1x8xf32, #tpu.memory_space<vmem>>, vector<1x1x8xf32>
    %10 = vector.shape_cast %9 : vector<1x1x8xf32> to vector<1x8xf32>
    %11 = vector.shape_cast %10 : vector<1x8xf32> to vector<1x8xf32>
    %12 = vector.broadcast %11 : vector<1x8xf32> to vector<8x8xf32>
    %c0_11 = arith.constant 0 : index
    %c0_12 = arith.constant 0 : index
    %13 = vector.load %arg8[%c0_11, %c0_12] : memref<16x96xbf16, #tpu.memory_space<vmem>>, vector<8x8xbf16>
    %c0_13 = arith.constant 0 : index
    %c32 = arith.constant 32 : index
    %14 = vector.load %arg8[%c0_13, %c32] : memref<16x96xbf16, #tpu.memory_space<vmem>>, vector<8x8xbf16>
    %c0_14 = arith.constant 0 : index
    %c64 = arith.constant 64 : index
    %15 = vector.load %arg8[%c0_14, %c64] : memref<16x96xbf16, #tpu.memory_space<vmem>>, vector<8x8xbf16>
    %cst_15 = arith.constant dense<0.000000e+00> : vector<8x8xf32>
    %16 = tpu.matmul %13, %14, %cst_15 {dimension_numbers = #tpu.dot_dimension_numbers<[1], [1], [0], [0], [0, 0, 1, 0], [], []>} : vector<8x8xbf16>, vector<8x8xbf16>, vector<8x8xf32> -> vector<8x8xf32>
    %17 = arith.addf %16, %12 : vector<8x8xf32>
    %cst_16 = arith.constant dense<0xFF800000> : vector<8xf32>
    %18 = vector.multi_reduction <maximumf>, %17, %cst_16 [1] : vector<8x8xf32> to vector<8xf32>
    %19 = vector.shape_cast %18 : vector<8xf32> to vector<8x1xf32>
    %20 = vector.broadcast %19 : vector<8x1xf32> to vector<8x8xf32>
    %21 = arith.subf %17, %20 : vector<8x8xf32>
    %22 = math.exp %21 : vector<8x8xf32>
    %cst_17 = arith.constant dense<0.000000e+00> : vector<8xf32>
    %23 = vector.multi_reduction <add>, %22, %cst_17 [1] : vector<8x8xf32> to vector<8xf32>
    %24 = vector.shape_cast %23 : vector<8xf32> to vector<8x1xf32>
    %25 = tpu.reciprocal %24 {approx = true} : vector<8x1xf32> -> vector<8x1xf32>
    %26 = vector.broadcast %25 : vector<8x1xf32> to vector<8x8xf32>
    %27 = arith.mulf %22, %26 : vector<8x8xf32>
    %28 = arith.truncf %27 : vector<8x8xf32> to vector<8x8xbf16>
    %cst_18 = arith.constant dense<0.000000e+00> : vector<8x8xf32>
    %29 = tpu.matmul %28, %15, %cst_18 {dimension_numbers = #tpu.dot_dimension_numbers<[1], [0], [0], [1], [0, 0, 1, 1], [], []>} : vector<8x8xbf16>, vector<8x8xbf16>, vector<8x8xf32> -> vector<8x8xf32>
    %30 = arith.truncf %29 : vector<8x8xf32> to vector<8x8xbf16>
    %c0_19 = arith.constant 0 : index
    %c0_20 = arith.constant 0 : index
    %31 = vector.load %arg9[%c0_19, %c0_20] : memref<16x32xbf16, #tpu.memory_space<vmem>>, vector<8x8xbf16>
    tpu.vector_store %arg9[%c0_19, %c0_20], %30 {strides = array<i32>} : memref<16x32xbf16, #tpu.memory_space<vmem>>, vector<8x8xbf16>,
    %c0_21 = arith.constant 0 : index
    %c8 = arith.constant 8 : index
    %32 = vector.load %arg8[%c0_21, %c8] : memref<16x96xbf16, #tpu.memory_space<vmem>>, vector<8x8xbf16>
    %c0_22 = arith.constant 0 : index
    %c40 = arith.constant 40 : index
    %33 = vector.load %arg8[%c0_22, %c40] : memref<16x96xbf16, #tpu.memory_space<vmem>>, vector<8x8xbf16>
    %c0_23 = arith.constant 0 : index
    %c72 = arith.constant 72 : index
    %34 = vector.load %arg8[%c0_23, %c72] : memref<16x96xbf16, #tpu.memory_space<vmem>>, vector<8x8xbf16>
    %cst_24 = arith.constant dense<0.000000e+00> : vector<8x8xf32>
    %35 = tpu.matmul %32, %33, %cst_24 {dimension_numbers = #tpu.dot_dimension_numbers<[1], [1], [0], [0], [0, 0, 1, 0], [], []>} : vector<8x8xbf16>, vector<8x8xbf16>, vector<8x8xf32> -> vector<8x8xf32>
    %36 = arith.addf %35, %12 : vector<8x8xf32>
    %cst_25 = arith.constant dense<0xFF800000> : vector<8xf32>
    %37 = vector.multi_reduction <maximumf>, %36, %cst_25 [1] : vector<8x8xf32> to vector<8xf32>
    %38 = vector.shape_cast %37 : vector<8xf32> to vector<8x1xf32>
    %39 = vector.broadcast %38 : vector<8x1xf32> to vector<8x8xf32>
    %40 = arith.subf %36, %39 : vector<8x8xf32>
    %41 = math.exp %40 : vector<8x8xf32>
    %cst_26 = arith.constant dense<0.000000e+00> : vector<8xf32>
    %42 = vector.multi_reduction <add>, %41, %cst_26 [1] : vector<8x8xf32> to vector<8xf32>
    %43 = vector.shape_cast %42 : vector<8xf32> to vector<8x1xf32>
    %44 = tpu.reciprocal %43 {approx = true} : vector<8x1xf32> -> vector<8x1xf32>
    %45 = vector.broadcast %44 : vector<8x1xf32> to vector<8x8xf32>
    %46 = arith.mulf %41, %45 : vector<8x8xf32>
    %47 = arith.truncf %46 : vector<8x8xf32> to vector<8x8xbf16>
    %cst_27 = arith.constant dense<0.000000e+00> : vector<8x8xf32>
    %48 = tpu.matmul %47, %34, %cst_27 {dimension_numbers = #tpu.dot_dimension_numbers<[1], [0], [0], [1], [0, 0, 1, 1], [], []>} : vector<8x8xbf16>, vector<8x8xbf16>, vector<8x8xf32> -> vector<8x8xf32>
    %49 = arith.truncf %48 : vector<8x8xf32> to vector<8x8xbf16>
    %c0_28 = arith.constant 0 : index
    %c8_29 = arith.constant 8 : index
    %50 = vector.load %arg9[%c0_28, %c8_29] : memref<16x32xbf16, #tpu.memory_space<vmem>>, vector<8x8xbf16>
    tpu.vector_store %arg9[%c0_28, %c8_29], %49 {strides = array<i32>} : memref<16x32xbf16, #tpu.memory_space<vmem>>, vector<8x8xbf16>,
    %c0_30 = arith.constant 0 : index
    %c16 = arith.constant 16 : index
    %51 = vector.load %arg8[%c0_30, %c16] : memref<16x96xbf16, #tpu.memory_space<vmem>>, vector<8x8xbf16>
    %c0_31 = arith.constant 0 : index
    %c48 = arith.constant 48 : index
    %52 = vector.load %arg8[%c0_31, %c48] : memref<16x96xbf16, #tpu.memory_space<vmem>>, vector<8x8xbf16>
    %c0_32 = arith.constant 0 : index
    %c80 = arith.constant 80 : index
    %53 = vector.load %arg8[%c0_32, %c80] : memref<16x96xbf16, #tpu.memory_space<vmem>>, vector<8x8xbf16>
    %cst_33 = arith.constant dense<0.000000e+00> : vector<8x8xf32>
    %54 = tpu.matmul %51, %52, %cst_33 {dimension_numbers = #tpu.dot_dimension_numbers<[1], [1], [0], [0], [0, 0, 1, 0], [], []>} : vector<8x8xbf16>, vector<8x8xbf16>, vector<8x8xf32> -> vector<8x8xf32>
    %55 = arith.addf %54, %12 : vector<8x8xf32>
    %cst_34 = arith.constant dense<0xFF800000> : vector<8xf32>
    %56 = vector.multi_reduction <maximumf>, %55, %cst_34 [1] : vector<8x8xf32> to vector<8xf32>
    %57 = vector.shape_cast %56 : vector<8xf32> to vector<8x1xf32>
    %58 = vector.broadcast %57 : vector<8x1xf32> to vector<8x8xf32>
    %59 = arith.subf %55, %58 : vector<8x8xf32>
    %60 = math.exp %59 : vector<8x8xf32>
    %cst_35 = arith.constant dense<0.000000e+00> : vector<8xf32>
    %61 = vector.multi_reduction <add>, %60, %cst_35 [1] : vector<8x8xf32> to vector<8xf32>
    %62 = vector.shape_cast %61 : vector<8xf32> to vector<8x1xf32>
    %63 = tpu.reciprocal %62 {approx = true} : vector<8x1xf32> -> vector<8x1xf32>
    %64 = vector.broadcast %63 : vector<8x1xf32> to vector<8x8xf32>
    %65 = arith.mulf %60, %64 : vector<8x8xf32>
    %66 = arith.truncf %65 : vector<8x8xf32> to vector<8x8xbf16>
    %cst_36 = arith.constant dense<0.000000e+00> : vector<8x8xf32>
    %67 = tpu.matmul %66, %53, %cst_36 {dimension_numbers = #tpu.dot_dimension_numbers<[1], [0], [0], [1], [0, 0, 1, 1], [], []>} : vector<8x8xbf16>, vector<8x8xbf16>, vector<8x8xf32> -> vector<8x8xf32>
    %68 = arith.truncf %67 : vector<8x8xf32> to vector<8x8xbf16>
    %c0_37 = arith.constant 0 : index
    %c16_38 = arith.constant 16 : index
    %69 = vector.load %arg9[%c0_37, %c16_38] : memref<16x32xbf16, #tpu.memory_space<vmem>>, vector<8x8xbf16>
    tpu.vector_store %arg9[%c0_37, %c16_38], %68 {strides = array<i32>} : memref<16x32xbf16, #tpu.memory_space<vmem>>, vector<8x8xbf16>,
    %c0_39 = arith.constant 0 : index
    %c24 = arith.constant 24 : index
    %70 = vector.load %arg8[%c0_39, %c24] : memref<16x96xbf16, #tpu.memory_space<vmem>>, vector<8x8xbf16>
    %c0_40 = arith.constant 0 : index
    %c56 = arith.constant 56 : index
    %71 = vector.load %arg8[%c0_40, %c56] : memref<16x96xbf16, #tpu.memory_space<vmem>>, vector<8x8xbf16>
    %c0_41 = arith.constant 0 : index
    %c88 = arith.constant 88 : index
    %72 = vector.load %arg8[%c0_41, %c88] : memref<16x96xbf16, #tpu.memory_space<vmem>>, vector<8x8xbf16>
    %cst_42 = arith.constant dense<0.000000e+00> : vector<8x8xf32>
    %73 = tpu.matmul %70, %71, %cst_42 {dimension_numbers = #tpu.dot_dimension_numbers<[1], [1], [0], [0], [0, 0, 1, 0], [], []>} : vector<8x8xbf16>, vector<8x8xbf16>, vector<8x8xf32> -> vector<8x8xf32>
    %74 = arith.addf %73, %12 : vector<8x8xf32>
    %cst_43 = arith.constant dense<0xFF800000> : vector<8xf32>
    %75 = vector.multi_reduction <maximumf>, %74, %cst_43 [1] : vector<8x8xf32> to vector<8xf32>
    %76 = vector.shape_cast %75 : vector<8xf32> to vector<8x1xf32>
    %77 = vector.broadcast %76 : vector<8x1xf32> to vector<8x8xf32>
    %78 = arith.subf %74, %77 : vector<8x8xf32>
    %79 = math.exp %78 : vector<8x8xf32>
    %cst_44 = arith.constant dense<0.000000e+00> : vector<8xf32>
    %80 = vector.multi_reduction <add>, %79, %cst_44 [1] : vector<8x8xf32> to vector<8xf32>
    %81 = vector.shape_cast %80 : vector<8xf32> to vector<8x1xf32>
    %82 = tpu.reciprocal %81 {approx = true} : vector<8x1xf32> -> vector<8x1xf32>
    %83 = vector.broadcast %82 : vector<8x1xf32> to vector<8x8xf32>
    %84 = arith.mulf %79, %83 : vector<8x8xf32>
    %85 = arith.truncf %84 : vector<8x8xf32> to vector<8x8xbf16>
    %cst_45 = arith.constant dense<0.000000e+00> : vector<8x8xf32>
    %86 = tpu.matmul %85, %72, %cst_45 {dimension_numbers = #tpu.dot_dimension_numbers<[1], [0], [0], [1], [0, 0, 1, 1], [], []>} : vector<8x8xbf16>, vector<8x8xbf16>, vector<8x8xf32> -> vector<8x8xf32>
    %87 = arith.truncf %86 : vector<8x8xf32> to vector<8x8xbf16>
    %c0_46 = arith.constant 0 : index
    %c24_47 = arith.constant 24 : index
    %88 = vector.load %arg9[%c0_46, %c24_47] : memref<16x32xbf16, #tpu.memory_space<vmem>>, vector<8x8xbf16>
    tpu.vector_store %arg9[%c0_46, %c24_47], %87 {strides = array<i32>} : memref<16x32xbf16, #tpu.memory_space<vmem>>, vector<8x8xbf16>,
    %c1 = arith.constant 1 : index
    %c0_48 = arith.constant 0 : index
    %c0_49 = arith.constant 0 : index
    %89 = vector.load %arg2[%c1, %c0_48, %c0_49] : memref<2x1x8xf32, #tpu.memory_space<vmem>>, vector<1x1x8xf32>
    %90 = vector.shape_cast %89 : vector<1x1x8xf32> to vector<1x8xf32>
    %91 = vector.shape_cast %90 : vector<1x8xf32> to vector<1x8xf32>
    %92 = vector.broadcast %91 : vector<1x8xf32> to vector<8x8xf32>
    %c8_50 = arith.constant 8 : index
    %c0_51 = arith.constant 0 : index
    %93 = vector.load %arg8[%c8_50, %c0_51] : memref<16x96xbf16, #tpu.memory_space<vmem>>, vector<8x8xbf16>
    %c8_52 = arith.constant 8 : index
    %c32_53 = arith.constant 32 : index
    %94 = vector.load %arg8[%c8_52, %c32_53] : memref<16x96xbf16, #tpu.memory_space<vmem>>, vector<8x8xbf16>
    %c8_54 = arith.constant 8 : index
    %c64_55 = arith.constant 64 : index
    %95 = vector.load %arg8[%c8_54, %c64_55] : memref<16x96xbf16, #tpu.memory_space<vmem>>, vector<8x8xbf16>
    %cst_56 = arith.constant dense<0.000000e+00> : vector<8x8xf32>
    %96 = tpu.matmul %93, %94, %cst_56 {dimension_numbers = #tpu.dot_dimension_numbers<[1], [1], [0], [0], [0, 0, 1, 0], [], []>} : vector<8x8xbf16>, vector<8x8xbf16>, vector<8x8xf32> -> vector<8x8xf32>
    %97 = arith.addf %96, %92 : vector<8x8xf32>
    %cst_57 = arith.constant dense<0xFF800000> : vector<8xf32>
    %98 = vector.multi_reduction <maximumf>, %97, %cst_57 [1] : vector<8x8xf32> to vector<8xf32>
    %99 = vector.shape_cast %98 : vector<8xf32> to vector<8x1xf32>
    %100 = vector.broadcast %99 : vector<8x1xf32> to vector<8x8xf32>
    %101 = arith.subf %97, %100 : vector<8x8xf32>
    %102 = math.exp %101 : vector<8x8xf32>
    %cst_58 = arith.constant dense<0.000000e+00> : vector<8xf32>
    %103 = vector.multi_reduction <add>, %102, %cst_58 [1] : vector<8x8xf32> to vector<8xf32>
    %104 = vector.shape_cast %103 : vector<8xf32> to vector<8x1xf32>
    %105 = tpu.reciprocal %104 {approx = true} : vector<8x1xf32> -> vector<8x1xf32>
    %106 = vector.broadcast %105 : vector<8x1xf32> to vector<8x8xf32>
    %107 = arith.mulf %102, %106 : vector<8x8xf32>
    %108 = arith.truncf %107 : vector<8x8xf32> to vector<8x8xbf16>
    %cst_59 = arith.constant dense<0.000000e+00> : vector<8x8xf32>
    %109 = tpu.matmul %108, %95, %cst_59 {dimension_numbers = #tpu.dot_dimension_numbers<[1], [0], [0], [1], [0, 0, 1, 1], [], []>} : vector<8x8xbf16>, vector<8x8xbf16>, vector<8x8xf32> -> vector<8x8xf32>
    %110 = arith.truncf %109 : vector<8x8xf32> to vector<8x8xbf16>
    %c8_60 = arith.constant 8 : index
    %c0_61 = arith.constant 0 : index
    %111 = vector.load %arg9[%c8_60, %c0_61] : memref<16x32xbf16, #tpu.memory_space<vmem>>, vector<8x8xbf16>
    tpu.vector_store %arg9[%c8_60, %c0_61], %110 {strides = array<i32>} : memref<16x32xbf16, #tpu.memory_space<vmem>>, vector<8x8xbf16>,
    %c8_62 = arith.constant 8 : index
    %c8_63 = arith.constant 8 : index
    %112 = vector.load %arg8[%c8_62, %c8_63] : memref<16x96xbf16, #tpu.memory_space<vmem>>, vector<8x8xbf16>
    %c8_64 = arith.constant 8 : index
    %c40_65 = arith.constant 40 : index
    %113 = vector.load %arg8[%c8_64, %c40_65] : memref<16x96xbf16, #tpu.memory_space<vmem>>, vector<8x8xbf16>
    %c8_66 = arith.constant 8 : index
    %c72_67 = arith.constant 72 : index
    %114 = vector.load %arg8[%c8_66, %c72_67] : memref<16x96xbf16, #tpu.memory_space<vmem>>, vector<8x8xbf16>
    %cst_68 = arith.constant dense<0.000000e+00> : vector<8x8xf32>
    %115 = tpu.matmul %112, %113, %cst_68 {dimension_numbers = #tpu.dot_dimension_numbers<[1], [1], [0], [0], [0, 0, 1, 0], [], []>} : vector<8x8xbf16>, vector<8x8xbf16>, vector<8x8xf32> -> vector<8x8xf32>
    %116 = arith.addf %115, %92 : vector<8x8xf32>
    %cst_69 = arith.constant dense<0xFF800000> : vector<8xf32>
    %117 = vector.multi_reduction <maximumf>, %116, %cst_69 [1] : vector<8x8xf32> to vector<8xf32>
    %118 = vector.shape_cast %117 : vector<8xf32> to vector<8x1xf32>
    %119 = vector.broadcast %118 : vector<8x1xf32> to vector<8x8xf32>
    %120 = arith.subf %116, %119 : vector<8x8xf32>
    %121 = math.exp %120 : vector<8x8xf32>
    %cst_70 = arith.constant dense<0.000000e+00> : vector<8xf32>
    %122 = vector.multi_reduction <add>, %121, %cst_70 [1] : vector<8x8xf32> to vector<8xf32>
    %123 = vector.shape_cast %122 : vector<8xf32> to vector<8x1xf32>
    %124 = tpu.reciprocal %123 {approx = true} : vector<8x1xf32> -> vector<8x1xf32>
    %125 = vector.broadcast %124 : vector<8x1xf32> to vector<8x8xf32>
    %126 = arith.mulf %121, %125 : vector<8x8xf32>
    %127 = arith.truncf %126 : vector<8x8xf32> to vector<8x8xbf16>
    %cst_71 = arith.constant dense<0.000000e+00> : vector<8x8xf32>
    %128 = tpu.matmul %127, %114, %cst_71 {dimension_numbers = #tpu.dot_dimension_numbers<[1], [0], [0], [1], [0, 0, 1, 1], [], []>} : vector<8x8xbf16>, vector<8x8xbf16>, vector<8x8xf32> -> vector<8x8xf32>
    %129 = arith.truncf %128 : vector<8x8xf32> to vector<8x8xbf16>
    %c8_72 = arith.constant 8 : index
    %c8_73 = arith.constant 8 : index
    %130 = vector.load %arg9[%c8_72, %c8_73] : memref<16x32xbf16, #tpu.memory_space<vmem>>, vector<8x8xbf16>
    tpu.vector_store %arg9[%c8_72, %c8_73], %129 {strides = array<i32>} : memref<16x32xbf16, #tpu.memory_space<vmem>>, vector<8x8xbf16>,
    %c8_74 = arith.constant 8 : index
    %c16_75 = arith.constant 16 : index
    %131 = vector.load %arg8[%c8_74, %c16_75] : memref<16x96xbf16, #tpu.memory_space<vmem>>, vector<8x8xbf16>
    %c8_76 = arith.constant 8 : index
    %c48_77 = arith.constant 48 : index
    %132 = vector.load %arg8[%c8_76, %c48_77] : memref<16x96xbf16, #tpu.memory_space<vmem>>, vector<8x8xbf16>
    %c8_78 = arith.constant 8 : index
    %c80_79 = arith.constant 80 : index
    %133 = vector.load %arg8[%c8_78, %c80_79] : memref<16x96xbf16, #tpu.memory_space<vmem>>, vector<8x8xbf16>
    %cst_80 = arith.constant dense<0.000000e+00> : vector<8x8xf32>
    %134 = tpu.matmul %131, %132, %cst_80 {dimension_numbers = #tpu.dot_dimension_numbers<[1], [1], [0], [0], [0, 0, 1, 0], [], []>} : vector<8x8xbf16>, vector<8x8xbf16>, vector<8x8xf32> -> vector<8x8xf32>
    %135 = arith.addf %134, %92 : vector<8x8xf32>
    %cst_81 = arith.constant dense<0xFF800000> : vector<8xf32>
    %136 = vector.multi_reduction <maximumf>, %135, %cst_81 [1] : vector<8x8xf32> to vector<8xf32>
    %137 = vector.shape_cast %136 : vector<8xf32> to vector<8x1xf32>
    %138 = vector.broadcast %137 : vector<8x1xf32> to vector<8x8xf32>
    %139 = arith.subf %135, %138 : vector<8x8xf32>
    %140 = math.exp %139 : vector<8x8xf32>
    %cst_82 = arith.constant dense<0.000000e+00> : vector<8xf32>
    %141 = vector.multi_reduction <add>, %140, %cst_82 [1] : vector<8x8xf32> to vector<8xf32>
    %142 = vector.shape_cast %141 : vector<8xf32> to vector<8x1xf32>
    %143 = tpu.reciprocal %142 {approx = true} : vector<8x1xf32> -> vector<8x1xf32>
    %144 = vector.broadcast %143 : vector<8x1xf32> to vector<8x8xf32>
    %145 = arith.mulf %140, %144 : vector<8x8xf32>
    %146 = arith.truncf %145 : vector<8x8xf32> to vector<8x8xbf16>
    %cst_83 = arith.constant dense<0.000000e+00> : vector<8x8xf32>
    %147 = tpu.matmul %146, %133, %cst_83 {dimension_numbers = #tpu.dot_dimension_numbers<[1], [0], [0], [1], [0, 0, 1, 1], [], []>} : vector<8x8xbf16>, vector<8x8xbf16>, vector<8x8xf32> -> vector<8x8xf32>
    %148 = arith.truncf %147 : vector<8x8xf32> to vector<8x8xbf16>
    %c8_84 = arith.constant 8 : index
    %c16_85 = arith.constant 16 : index
    %149 = vector.load %arg9[%c8_84, %c16_85] : memref<16x32xbf16, #tpu.memory_space<vmem>>, vector<8x8xbf16>
    tpu.vector_store %arg9[%c8_84, %c16_85], %148 {strides = array<i32>} : memref<16x32xbf16, #tpu.memory_space<vmem>>, vector<8x8xbf16>,
    %c8_86 = arith.constant 8 : index
    %c24_87 = arith.constant 24 : index
    %150 = vector.load %arg8[%c8_86, %c24_87] : memref<16x96xbf16, #tpu.memory_space<vmem>>, vector<8x8xbf16>
    %c8_88 = arith.constant 8 : index
    %c56_89 = arith.constant 56 : index
    %151 = vector.load %arg8[%c8_88, %c56_89] : memref<16x96xbf16, #tpu.memory_space<vmem>>, vector<8x8xbf16>
    %c8_90 = arith.constant 8 : index
    %c88_91 = arith.constant 88 : index
    %152 = vector.load %arg8[%c8_90, %c88_91] : memref<16x96xbf16, #tpu.memory_space<vmem>>, vector<8x8xbf16>
    %cst_92 = arith.constant dense<0.000000e+00> : vector<8x8xf32>
    %153 = tpu.matmul %150, %151, %cst_92 {dimension_numbers = #tpu.dot_dimension_numbers<[1], [1], [0], [0], [0, 0, 1, 0], [], []>} : vector<8x8xbf16>, vector<8x8xbf16>, vector<8x8xf32> -> vector<8x8xf32>
    %154 = arith.addf %153, %92 : vector<8x8xf32>
    %cst_93 = arith.constant dense<0xFF800000> : vector<8xf32>
    %155 = vector.multi_reduction <maximumf>, %154, %cst_93 [1] : vector<8x8xf32> to vector<8xf32>
    %156 = vector.shape_cast %155 : vector<8xf32> to vector<8x1xf32>
    %157 = vector.broadcast %156 : vector<8x1xf32> to vector<8x8xf32>
    %158 = arith.subf %154, %157 : vector<8x8xf32>
    %159 = math.exp %158 : vector<8x8xf32>
    %cst_94 = arith.constant dense<0.000000e+00> : vector<8xf32>
    %160 = vector.multi_reduction <add>, %159, %cst_94 [1] : vector<8x8xf32> to vector<8xf32>
    %161 = vector.shape_cast %160 : vector<8xf32> to vector<8x1xf32>
    %162 = tpu.reciprocal %161 {approx = true} : vector<8x1xf32> -> vector<8x1xf32>
    %163 = vector.broadcast %162 : vector<8x1xf32> to vector<8x8xf32>
    %164 = arith.mulf %159, %163 : vector<8x8xf32>
    %165 = arith.truncf %164 : vector<8x8xf32> to vector<8x8xbf16>
    %cst_95 = arith.constant dense<0.000000e+00> : vector<8x8xf32>
    %166 = tpu.matmul %165, %152, %cst_95 {dimension_numbers = #tpu.dot_dimension_numbers<[1], [0], [0], [1], [0, 0, 1, 1], [], []>} : vector<8x8xbf16>, vector<8x8xbf16>, vector<8x8xf32> -> vector<8x8xf32>
    %167 = arith.truncf %166 : vector<8x8xf32> to vector<8x8xbf16>
    %c8_96 = arith.constant 8 : index
    %c24_97 = arith.constant 24 : index
    %168 = vector.load %arg9[%c8_96, %c24_97] : memref<16x32xbf16, #tpu.memory_space<vmem>>, vector<8x8xbf16>
    tpu.vector_store %arg9[%c8_96, %c24_97], %167 {strides = array<i32>} : memref<16x32xbf16, #tpu.memory_space<vmem>>, vector<8x8xbf16>,
    %c0_98 = arith.constant 0 : index
    %c0_99 = arith.constant 0 : index
    %169 = vector.load %arg9[%c0_98, %c0_99] : memref<16x32xbf16, #tpu.memory_space<vmem>>, vector<16x32xbf16>
    %c0_100 = arith.constant 0 : index
    %c0_101 = arith.constant 0 : index
    %170 = vector.load %arg5[%c0_100, %c0_101] : memref<32x32xbf16, #tpu.memory_space<vmem>>, vector<32x32xbf16>
    %cst_102 = arith.constant dense<0.000000e+00> : vector<16x32xf32>
    %171 = tpu.matmul %169, %170, %cst_102 {dimension_numbers = #tpu.dot_dimension_numbers<[1], [0], [0], [1], [0, 0, 1, 1], [], []>} : vector<16x32xbf16>, vector<32x32xbf16>, vector<16x32xf32> -> vector<16x32xf32>
    %c0_103 = arith.constant 0 : index
    %c0_104 = arith.constant 0 : index
    %172 = vector.load %arg6[%c0_103, %c0_104] : memref<1x32xf32, #tpu.memory_space<vmem>>, vector<1x32xf32>
    %173 = vector.broadcast %172 : vector<1x32xf32> to vector<16x32xf32>
    %174 = arith.addf %171, %173 : vector<16x32xf32>
    %175 = vector.shape_cast %174 : vector<16x32xf32> to vector<2x8x32xf32>
    %c0_105 = arith.constant 0 : index
    %c0_106 = arith.constant 0 : index
    %c0_107 = arith.constant 0 : index
    %176 = vector.load %arg7[%c0_105, %c0_106, %c0_107] : memref<2x8x32xf32, #tpu.memory_space<vmem>>, vector<2x8x32xf32>
    tpu.vector_store %arg7[%c0_105, %c0_106, %c0_107], %175 {strides = array<i32>} : memref<2x8x32xf32, #tpu.memory_space<vmem>>, vector<2x8x32xf32>,
    return
  }
  func.func @transform_0(%arg0: i32) -> (i32, i32, i32) {
    %c0_i32 = arith.constant 0 : i32
    %c0_i32_0 = arith.constant 0 : i32
    %c0_i32_1 = arith.constant 0 : i32
    return %arg0, %c0_i32, %c0_i32_0 : i32, i32, i32
  }
  func.func @transform_1(%arg0: i32) -> (i32, i32, i32) {
    %c0_i32 = arith.constant 0 : i32
    %c0_i32_0 = arith.constant 0 : i32
    %c0_i32_1 = arith.constant 0 : i32
    return %arg0, %c0_i32, %c0_i32_0 : i32, i32, i32
  }
  func.func @transform_2(%arg0: i32) -> (i32, i32) {
    %c0_i32 = arith.constant 0 : i32
    %c0_i32_0 = arith.constant 0 : i32
    %c0_i32_1 = arith.constant 0 : i32
    return %c0_i32, %c0_i32_0 : i32, i32
  }
  func.func @transform_3(%arg0: i32) -> (i32, i32) {
    %c0_i32 = arith.constant 0 : i32
    %c0_i32_0 = arith.constant 0 : i32
    %c0_i32_1 = arith.constant 0 : i32
    return %c0_i32, %c0_i32_0 : i32, i32
  }
  func.func @transform_4(%arg0: i32) -> (i32, i32) {
    %c0_i32 = arith.constant 0 : i32
    %c0_i32_0 = arith.constant 0 : i32
    %c0_i32_1 = arith.constant 0 : i32
    return %c0_i32, %c0_i32_0 : i32, i32
  }
  func.func @transform_5(%arg0: i32) -> (i32, i32) {
    %c0_i32 = arith.constant 0 : i32
    %c0_i32_0 = arith.constant 0 : i32
    %c0_i32_1 = arith.constant 0 : i32
    return %c0_i32, %c0_i32_0 : i32, i32
  }
  func.func @transform_6(%arg0: i32) -> (i32, i32, i32) {
    %c0_i32 = arith.constant 0 : i32
    %c0_i32_0 = arith.constant 0 : i32
    %c0_i32_1 = arith.constant 0 : i32
    return %arg0, %c0_i32, %c0_i32_0 : i32, i32, i32
  }
}

module attributes {stable_mosaic.version = 11 : i64} {
  func.func @_mha_kernel(%arg0: i32, %arg1: memref<2x8x32xbf16, #tpu.memory_space<vmem>>, %arg2: memref<2x1x8xf32, #tpu.memory_space<vmem>>, %arg3: memref<32x96xbf16, #tpu.memory_space<vmem>>, %arg4: memref<1x96xf32, #tpu.memory_space<vmem>>, %arg5: memref<32x32xbf16, #tpu.memory_space<vmem>>, %arg6: memref<1x32xf32, #tpu.memory_space<vmem>>, %arg7: memref<2x8x32xf32, #tpu.memory_space<vmem>>, %arg8: memref<16x96xbf16, #tpu.memory_space<vmem>>, %arg9: memref<16x32xbf16, #tpu.memory_space<vmem>>) attributes {dimension_semantics = [#tpu.dimension_semantics<parallel>], iteration_bounds = array<i64: 1>, scalar_prefetch = 0 : i64, scratch_operands = 2 : i64, tpu.core_type = #tpu.core_type<tc>, window_params = [{transform_indices = @transform_0, window_bounds = array<i64: 2, 8, 32>}, {transform_indices = @transform_1, window_bounds = array<i64: 2, 1, 8>}, {pipeline_mode = #tpu.pipeline_mode<synchronous>, transform_indices = @transform_2, window_bounds = array<i64: 32, 96>}, {pipeline_mode = #tpu.pipeline_mode<synchronous>, transform_indices = @transform_3, window_bounds = array<i64: 1, 96>}, {pipeline_mode = #tpu.pipeline_mode<synchronous>, transform_indices = @transform_4, window_bounds = array<i64: 32, 32>}, {pipeline_mode = #tpu.pipeline_mode<synchronous>, transform_indices = @transform_5, window_bounds = array<i64: 1, 32>}, {transform_indices = @transform_6, window_bounds = array<i64: 2, 8, 32>}]} {
    %c0 = arith.constant 0 : index
    %c0_0 = arith.constant 0 : index
    %c0_1 = arith.constant 0 : index
    %0 = vector.load %arg1[%c0, %c0_0, %c0_1] : memref<2x8x32xbf16, #tpu.memory_space<vmem>>, vector<2x8x32xbf16>
    %1 = vector.shape_cast %0 : vector<2x8x32xbf16> to vector<16x32xbf16>
    %c0_2 = arith.constant 0 : index
    %c0_3 = arith.constant 0 : index
    %2 = vector.load %arg3[%c0_2, %c0_3] : memref<32x96xbf16, #tpu.memory_space<vmem>>, vector<32x96xbf16>
    %cst = arith.constant dense<0.000000e+00> : vector<16x96xf32>
    %3 = tpu.matmul %1, %2, %cst {dimension_numbers = #tpu.dot_dimension_numbers<[1], [0], [0], [1], [0, 0, 1, 1], [], []>} : vector<16x32xbf16>, vector<32x96xbf16>, vector<16x96xf32> -> vector<16x96xf32>
    %c0_4 = arith.constant 0 : index
    %c0_5 = arith.constant 0 : index
    %4 = vector.load %arg4[%c0_4, %c0_5] : memref<1x96xf32, #tpu.memory_space<vmem>>, vector<1x96xf32>
    %5 = vector.broadcast %4 : vector<1x96xf32> to vector<16x96xf32>
    %6 = arith.addf %3, %5 : vector<16x96xf32>
    %7 = arith.truncf %6 : vector<16x96xf32> to vector<16x96xbf16>
    %c0_6 = arith.constant 0 : index
    %c0_7 = arith.constant 0 : index
    %8 = vector.load %arg8[%c0_6, %c0_7] : memref<16x96xbf16, #tpu.memory_space<vmem>>, vector<16x96xbf16>
    tpu.vector_store %arg8[%c0_6, %c0_7], %7 {strides = array<i32>} : memref<16x96xbf16, #tpu.memory_space<vmem>>, vector<16x96xbf16>,
    %c0_8 = arith.constant 0 : index
    %c0_9 = arith.constant 0 : index
    %c0_10 = arith.constant 0 : index
    %9 = vector.load %arg2[%c0_8, %c0_9, %c0_10] : memref<2x1x8xf32, #tpu.memory_space<vmem>>, vector<1x1x8xf32>
    %10 = vector.shape_cast %9 : vector<1x1x8xf32> to vector<1x8xf32>
    %11 = vector.shape_cast %10 : vector<1x8xf32> to vector<1x8xf32>
    %12 = vector.broadcast %11 : vector<1x8xf32> to vector<8x8xf32>
    %c0_11 = arith.constant 0 : index
    %c0_12 = arith.constant 0 : index
    %13 = vector.load %arg8[%c0_11, %c0_12] : memref<16x96xbf16, #tpu.memory_space<vmem>>, vector<8x8xbf16>
    %c0_13 = arith.constant 0 : index
    %c32 = arith.constant 32 : index
    %14 = vector.load %arg8[%c0_13, %c32] : memref<16x96xbf16, #tpu.memory_space<vmem>>, vector<8x8xbf16>
    %c0_14 = arith.constant 0 : index
    %c64 = arith.constant 64 : index
    %15 = vector.load %arg8[%c0_14, %c64] : memref<16x96xbf16, #tpu.memory_space<vmem>>, vector<8x8xbf16>
    %cst_15 = arith.constant dense<0.000000e+00> : vector<8x8xf32>
    %16 = tpu.matmul %13, %14, %cst_15 {dimension_numbers = #tpu.dot_dimension_numbers<[1], [1], [0], [0], [0, 0, 1, 0], [], []>} : vector<8x8xbf16>, vector<8x8xbf16>, vector<8x8xf32> -> vector<8x8xf32>
    %17 = arith.addf %16, %12 : vector<8x8xf32>
    %cst_16 = arith.constant dense<0xFF800000> : vector<8xf32>
    %18 = vector.multi_reduction <maximumf>, %17, %cst_16 [1] : vector<8x8xf32> to vector<8xf32>
    %19 = vector.shape_cast %18 : vector<8xf32> to vector<8x1xf32>
    %20 = vector.broadcast %19 : vector<8x1xf32> to vector<8x8xf32>
    %21 = arith.subf %17, %20 : vector<8x8xf32>
    %22 = math.exp %21 : vector<8x8xf32>
    %cst_17 = arith.constant dense<0.000000e+00> : vector<8xf32>
    %23 = vector.multi_reduction <add>, %22, %cst_17 [1] : vector<8x8xf32> to vector<8xf32>
    %24 = vector.shape_cast %23 : vector<8xf32> to vector<8x1xf32>
    %25 = tpu.reciprocal %24 {approx = true} : vector<8x1xf32> -> vector<8x1xf32>
    %26 = vector.broadcast %25 : vector<8x1xf32> to vector<8x8xf32>
    %27 = arith.mulf %22, %26 : vector<8x8xf32>
    %28 = arith.truncf %27 : vector<8x8xf32> to vector<8x8xbf16>
    %cst_18 = arith.constant dense<0.000000e+00> : vector<8x8xf32>
    %29 = tpu.matmul %28, %15, %cst_18 {dimension_numbers = #tpu.dot_dimension_numbers<[1], [0], [0], [1], [0, 0, 1, 1], [], []>} : vector<8x8xbf16>, vector<8x8xbf16>, vector<8x8xf32> -> vector<8x8xf32>
    %30 = arith.truncf %29 : vector<8x8xf32> to vector<8x8xbf16>
    %c0_19 = arith.constant 0 : index
    %c0_20 = arith.constant 0 : index
    %31 = vector.load %arg9[%c0_19, %c0_20] : memref<16x32xbf16, #tpu.memory_space<vmem>>, vector<8x8xbf16>
    tpu.vector_store %arg9[%c0_19, %c0_20], %30 {strides = array<i32>} : memref<16x32xbf16, #tpu.memory_space<vmem>>, vector<8x8xbf16>,
    %c0_21 = arith.constant 0 : index
    %c8 = arith.constant 8 : index
    %32 = vector.load %arg8[%c0_21, %c8] : memref<16x96xbf16, #tpu.memory_space<vmem>>, vector<8x8xbf16>
    %c0_22 = arith.constant 0 : index
    %c40 = arith.constant 40 : index
    %33 = vector.load %arg8[%c0_22, %c40] : memref<16x96xbf16, #tpu.memory_space<vmem>>, vector<8x8xbf16>
    %c0_23 = arith.constant 0 : index
    %c72 = arith.constant 72 : index
    %34 = vector.load %arg8[%c0_23, %c72] : memref<16x96xbf16, #tpu.memory_space<vmem>>, vector<8x8xbf16>
    %cst_24 = arith.constant dense<0.000000e+00> : vector<8x8xf32>
    %35 = tpu.matmul %32, %33, %cst_24 {dimension_numbers = #tpu.dot_dimension_numbers<[1], [1], [0], [0], [0, 0, 1, 0], [], []>} : vector<8x8xbf16>, vector<8x8xbf16>, vector<8x8xf32> -> vector<8x8xf32>
    %36 = arith.addf %35, %12 : vector<8x8xf32>
    %cst_25 = arith.constant dense<0xFF800000> : vector<8xf32>
    %37 = vector.multi_reduction <maximumf>, %36, %cst_25 [1] : vector<8x8xf32> to vector<8xf32>
    %38 = vector.shape_cast %37 : vector<8xf32> to vector<8x1xf32>
    %39 = vector.broadcast %38 : vector<8x1xf32> to vector<8x8xf32>
    %40 = arith.subf %36, %39 : vector<8x8xf32>
    %41 = math.exp %40 : vector<8x8xf32>
    %cst_26 = arith.constant dense<0.000000e+00> : vector<8xf32>
    %42 = vector.multi_reduction <add>, %41, %cst_26 [1] : vector<8x8xf32> to vector<8xf32>
    %43 = vector.shape_cast %42 : vector<8xf32> to vector<8x1xf32>
    %44 = tpu.reciprocal %43 {approx = true} : vector<8x1xf32> -> vector<8x1xf32>
    %45 = vector.broadcast %44 : vector<8x1xf32> to vector<8x8xf32>
    %46 = arith.mulf %41, %45 : vector<8x8xf32>
    %47 = arith.truncf %46 : vector<8x8xf32> to vector<8x8xbf16>
    %cst_27 = arith.constant dense<0.000000e+00> : vector<8x8xf32>
    %48 = tpu.matmul %47, %34, %cst_27 {dimension_numbers = #tpu.dot_dimension_numbers<[1], [0], [0], [1], [0, 0, 1, 1], [], []>} : vector<8x8xbf16>, vector<8x8xbf16>, vector<8x8xf32> -> vector<8x8xf32>
    %49 = arith.truncf %48 : vector<8x8xf32> to vector<8x8xbf16>
    %c0_28 = arith.constant 0 : index
    %c8_29 = arith.constant 8 : index
    %50 = vector.load %arg9[%c0_28, %c8_29] : memref<16x32xbf16, #tpu.memory_space<vmem>>, vector<8x8xbf16>
    tpu.vector_store %arg9[%c0_28, %c8_29], %49 {strides = array<i32>} : memref<16x32xbf16, #tpu.memory_space<vmem>>, vector<8x8xbf16>,
    %c0_30 = arith.constant 0 : index
    %c16 = arith.constant 16 : index
    %51 = vector.load %arg8[%c0_30, %c16] : memref<16x96xbf16, #tpu.memory_space<vmem>>, vector<8x8xbf16>
    %c0_31 = arith.constant 0 : index
    %c48 = arith.constant 48 : index
    %52 = vector.load %arg8[%c0_31, %c48] : memref<16x96xbf16, #tpu.memory_space<vmem>>, vector<8x8xbf16>
    %c0_32 = arith.constant 0 : index
    %c80 = arith.constant 80 : index
    %53 = vector.load %arg8[%c0_32, %c80] : memref<16x96xbf16, #tpu.memory_space<vmem>>, vector<8x8xbf16>
    %cst_33 = arith.constant dense<0.000000e+00> : vector<8x8xf32>
    %54 = tpu.matmul %51, %52, %cst_33 {dimension_numbers = #tpu.dot_dimension_numbers<[1], [1], [0], [0], [0, 0, 1, 0], [], []>} : vector<8x8xbf16>, vector<8x8xbf16>, vector<8x8xf32> -> vector<8x8xf32>
    %55 = arith.addf %54, %12 : vector<8x8xf32>
    %cst_34 = arith.constant dense<0xFF800000> : vector<8xf32>
    %56 = vector.multi_reduction <maximumf>, %55, %cst_34 [1] : vector<8x8xf32> to vector<8xf32>
    %57 = vector.shape_cast %56 : vector<8xf32> to vector<8x1xf32>
    %58 = vector.broadcast %57 : vector<8x1xf32> to vector<8x8xf32>
    %59 = arith.subf %55, %58 : vector<8x8xf32>
    %60 = math.exp %59 : vector<8x8xf32>
    %cst_35 = arith.constant dense<0.000000e+00> : vector<8xf32>
    %61 = vector.multi_reduction <add>, %60, %cst_35 [1] : vector<8x8xf32> to vector<8xf32>
    %62 = vector.shape_cast %61 : vector<8xf32> to vector<8x1xf32>
    %63 = tpu.reciprocal %62 {approx = true} : vector<8x1xf32> -> vector<8x1xf32>
    %64 = vector.broadcast %63 : vector<8x1xf32> to vector<8x8xf32>
    %65 = arith.mulf %60, %64 : vector<8x8xf32>
    %66 = arith.truncf %65 : vector<8x8xf32> to vector<8x8xbf16>
    %cst_36 = arith.constant dense<0.000000e+00> : vector<8x8xf32>
    %67 = tpu.matmul %66, %53, %cst_36 {dimension_numbers = #tpu.dot_dimension_numbers<[1], [0], [0], [1], [0, 0, 1, 1], [], []>} : vector<8x8xbf16>, vector<8x8xbf16>, vector<8x8xf32> -> vector<8x8xf32>
    %68 = arith.truncf %67 : vector<8x8xf32> to vector<8x8xbf16>
    %c0_37 = arith.constant 0 : index
    %c16_38 = arith.constant 16 : index
    %69 = vector.load %arg9[%c0_37, %c16_38] : memref<16x32xbf16, #tpu.memory_space<vmem>>, vector<8x8xbf16>
    tpu.vector_store %arg9[%c0_37, %c16_38], %68 {strides = array<i32>} : memref<16x32xbf16, #tpu.memory_space<vmem>>, vector<8x8xbf16>,
    %c0_39 = arith.constant 0 : index
    %c24 = arith.constant 24 : index
    %70 = vector.load %arg8[%c0_39, %c24] : memref<16x96xbf16, #tpu.memory_space<vmem>>, vector<8x8xbf16>
    %c0_40 = arith.constant 0 : index
    %c56 = arith.constant 56 : index
    %71 = vector.load %arg8[%c0_40, %c56] : memref<16x96xbf16, #tpu.memory_space<vmem>>, vector<8x8xbf16>
    %c0_41 = arith.constant 0 : index
    %c88 = arith.constant 88 : index
    %72 = vector.load %arg8[%c0_41, %c88] : memref<16x96xbf16, #tpu.memory_space<vmem>>, vector<8x8xbf16>
    %cst_42 = arith.constant dense<0.000000e+00> : vector<8x8xf32>
    %73 = tpu.matmul %70, %71, %cst_42 {dimension_numbers = #tpu.dot_dimension_numbers<[1], [1], [0], [0], [0, 0, 1, 0], [], []>} : vector<8x8xbf16>, vector<8x8xbf16>, vector<8x8xf32> -> vector<8x8xf32>
    %74 = arith.addf %73, %12 : vector<8x8xf32>
    %cst_43 = arith.constant dense<0xFF800000> : vector<8xf32>
    %75 = vector.multi_reduction <maximumf>, %74, %cst_43 [1] : vector<8x8xf32> to vector<8xf32>
    %76 = vector.shape_cast %75 : vector<8xf32> to vector<8x1xf32>
    %77 = vector.broadcast %76 : vector<8x1xf32> to vector<8x8xf32>
    %78 = arith.subf %74, %77 : vector<8x8xf32>
    %79 = math.exp %78 : vector<8x8xf32>
    %cst_44 = arith.constant dense<0.000000e+00> : vector<8xf32>
    %80 = vector.multi_reduction <add>, %79, %cst_44 [1] : vector<8x8xf32> to vector<8xf32>
    %81 = vector.shape_cast %80 : vector<8xf32> to vector<8x1xf32>
    %82 = tpu.reciprocal %81 {approx = true} : vector<8x1xf32> -> vector<8x1xf32>
    %83 = vector.broadcast %82 : vector<8x1xf32> to vector<8x8xf32>
    %84 = arith.mulf %79, %83 : vector<8x8xf32>
    %85 = arith.truncf %84 : vector<8x8xf32> to vector<8x8xbf16>
    %cst_45 = arith.constant dense<0.000000e+00> : vector<8x8xf32>
    %86 = tpu.matmul %85, %72, %cst_45 {dimension_numbers = #tpu.dot_dimension_numbers<[1], [0], [0], [1], [0, 0, 1, 1], [], []>} : vector<8x8xbf16>, vector<8x8xbf16>, vector<8x8xf32> -> vector<8x8xf32>
    %87 = arith.truncf %86 : vector<8x8xf32> to vector<8x8xbf16>
    %c0_46 = arith.constant 0 : index
    %c24_47 = arith.constant 24 : index
    %88 = vector.load %arg9[%c0_46, %c24_47] : memref<16x32xbf16, #tpu.memory_space<vmem>>, vector<8x8xbf16>
    tpu.vector_store %arg9[%c0_46, %c24_47], %87 {strides = array<i32>} : memref<16x32xbf16, #tpu.memory_space<vmem>>, vector<8x8xbf16>,
    %c1 = arith.constant 1 : index
    %c0_48 = arith.constant 0 : index
    %c0_49 = arith.constant 0 : index
    %89 = vector.load %arg2[%c1, %c0_48, %c0_49] : memref<2x1x8xf32, #tpu.memory_space<vmem>>, vector<1x1x8xf32>
    %90 = vector.shape_cast %89 : vector<1x1x8xf32> to vector<1x8xf32>
    %91 = vector.shape_cast %90 : vector<1x8xf32> to vector<1x8xf32>
    %92 = vector.broadcast %91 : vector<1x8xf32> to vector<8x8xf32>
    %c8_50 = arith.constant 8 : index
    %c0_51 = arith.constant 0 : index
    %93 = vector.load %arg8[%c8_50, %c0_51] : memref<16x96xbf16, #tpu.memory_space<vmem>>, vector<8x8xbf16>
    %c8_52 = arith.constant 8 : index
    %c32_53 = arith.constant 32 : index
    %94 = vector.load %arg8[%c8_52, %c32_53] : memref<16x96xbf16, #tpu.memory_space<vmem>>, vector<8x8xbf16>
    %c8_54 = arith.constant 8 : index
    %c64_55 = arith.constant 64 : index
    %95 = vector.load %arg8[%c8_54, %c64_55] : memref<16x96xbf16, #tpu.memory_space<vmem>>, vector<8x8xbf16>
    %cst_56 = arith.constant dense<0.000000e+00> : vector<8x8xf32>
    %96 = tpu.matmul %93, %94, %cst_56 {dimension_numbers = #tpu.dot_dimension_numbers<[1], [1], [0], [0], [0, 0, 1, 0], [], []>} : vector<8x8xbf16>, vector<8x8xbf16>, vector<8x8xf32> -> vector<8x8xf32>
    %97 = arith.addf %96, %92 : vector<8x8xf32>
    %cst_57 = arith.constant dense<0xFF800000> : vector<8xf32>
    %98 = vector.multi_reduction <maximumf>, %97, %cst_57 [1] : vector<8x8xf32> to vector<8xf32>
    %99 = vector.shape_cast %98 : vector<8xf32> to vector<8x1xf32>
    %100 = vector.broadcast %99 : vector<8x1xf32> to vector<8x8xf32>
    %101 = arith.subf %97, %100 : vector<8x8xf32>
    %102 = math.exp %101 : vector<8x8xf32>
    %cst_58 = arith.constant dense<0.000000e+00> : vector<8xf32>
    %103 = vector.multi_reduction <add>, %102, %cst_58 [1] : vector<8x8xf32> to vector<8xf32>
    %104 = vector.shape_cast %103 : vector<8xf32> to vector<8x1xf32>
    %105 = tpu.reciprocal %104 {approx = true} : vector<8x1xf32> -> vector<8x1xf32>
    %106 = vector.broadcast %105 : vector<8x1xf32> to vector<8x8xf32>
    %107 = arith.mulf %102, %106 : vector<8x8xf32>
    %108 = arith.truncf %107 : vector<8x8xf32> to vector<8x8xbf16>
    %cst_59 = arith.constant dense<0.000000e+00> : vector<8x8xf32>
    %109 = tpu.matmul %108, %95, %cst_59 {dimension_numbers = #tpu.dot_dimension_numbers<[1], [0], [0], [1], [0, 0, 1, 1], [], []>} : vector<8x8xbf16>, vector<8x8xbf16>, vector<8x8xf32> -> vector<8x8xf32>
    %110 = arith.truncf %109 : vector<8x8xf32> to vector<8x8xbf16>
    %c8_60 = arith.constant 8 : index
    %c0_61 = arith.constant 0 : index
    %111 = vector.load %arg9[%c8_60, %c0_61] : memref<16x32xbf16, #tpu.memory_space<vmem>>, vector<8x8xbf16>
    tpu.vector_store %arg9[%c8_60, %c0_61], %110 {strides = array<i32>} : memref<16x32xbf16, #tpu.memory_space<vmem>>, vector<8x8xbf16>,
    %c8_62 = arith.constant 8 : index
    %c8_63 = arith.constant 8 : index
    %112 = vector.load %arg8[%c8_62, %c8_63] : memref<16x96xbf16, #tpu.memory_space<vmem>>, vector<8x8xbf16>
    %c8_64 = arith.constant 8 : index
    %c40_65 = arith.constant 40 : index
    %113 = vector.load %arg8[%c8_64, %c40_65] : memref<16x96xbf16, #tpu.memory_space<vmem>>, vector<8x8xbf16>
    %c8_66 = arith.constant 8 : index
    %c72_67 = arith.constant 72 : index
    %114 = vector.load %arg8[%c8_66, %c72_67] : memref<16x96xbf16, #tpu.memory_space<vmem>>, vector<8x8xbf16>
    %cst_68 = arith.constant dense<0.000000e+00> : vector<8x8xf32>
    %115 = tpu.matmul %112, %113, %cst_68 {dimension_numbers = #tpu.dot_dimension_numbers<[1], [1], [0], [0], [0, 0, 1, 0], [], []>} : vector<8x8xbf16>, vector<8x8xbf16>, vector<8x8xf32> -> vector<8x8xf32>
    %116 = arith.addf %115, %92 : vector<8x8xf32>
    %cst_69 = arith.constant dense<0xFF800000> : vector<8xf32>
    %117 = vector.multi_reduction <maximumf>, %116, %cst_69 [1] : vector<8x8xf32> to vector<8xf32>
    %118 = vector.shape_cast %117 : vector<8xf32> to vector<8x1xf32>
    %119 = vector.broadcast %118 : vector<8x1xf32> to vector<8x8xf32>
    %120 = arith.subf %116, %119 : vector<8x8xf32>
    %121 = math.exp %120 : vector<8x8xf32>
    %cst_70 = arith.constant dense<0.000000e+00> : vector<8xf32>
    %122 = vector.multi_reduction <add>, %121, %cst_70 [1] : vector<8x8xf32> to vector<8xf32>
    %123 = vector.shape_cast %122 : vector<8xf32> to vector<8x1xf32>
    %124 = tpu.reciprocal %123 {approx = true} : vector<8x1xf32> -> vector<8x1xf32>
    %125 = vector.broadcast %124 : vector<8x1xf32> to vector<8x8xf32>
    %126 = arith.mulf %121, %125 : vector<8x8xf32>
    %127 = arith.truncf %126 : vector<8x8xf32> to vector<8x8xbf16>
    %cst_71 = arith.constant dense<0.000000e+00> : vector<8x8xf32>
    %128 = tpu.matmul %127, %114, %cst_71 {dimension_numbers = #tpu.dot_dimension_numbers<[1], [0], [0], [1], [0, 0, 1, 1], [], []>} : vector<8x8xbf16>, vector<8x8xbf16>, vector<8x8xf32> -> vector<8x8xf32>
    %129 = arith.truncf %128 : vector<8x8xf32> to vector<8x8xbf16>
    %c8_72 = arith.constant 8 : index
    %c8_73 = arith.constant 8 : index
    %130 = vector.load %arg9[%c8_72, %c8_73] : memref<16x32xbf16, #tpu.memory_space<vmem>>, vector<8x8xbf16>
    tpu.vector_store %arg9[%c8_72, %c8_73], %129 {strides = array<i32>} : memref<16x32xbf16, #tpu.memory_space<vmem>>, vector<8x8xbf16>,
    %c8_74 = arith.constant 8 : index
    %c16_75 = arith.constant 16 : index
    %131 = vector.load %arg8[%c8_74, %c16_75] : memref<16x96xbf16, #tpu.memory_space<vmem>>, vector<8x8xbf16>
    %c8_76 = arith.constant 8 : index
    %c48_77 = arith.constant 48 : index
    %132 = vector.load %arg8[%c8_76, %c48_77] : memref<16x96xbf16, #tpu.memory_space<vmem>>, vector<8x8xbf16>
    %c8_78 = arith.constant 8 : index
    %c80_79 = arith.constant 80 : index
    %133 = vector.load %arg8[%c8_78, %c80_79] : memref<16x96xbf16, #tpu.memory_space<vmem>>, vector<8x8xbf16>
    %cst_80 = arith.constant dense<0.000000e+00> : vector<8x8xf32>
    %134 = tpu.matmul %131, %132, %cst_80 {dimension_numbers = #tpu.dot_dimension_numbers<[1], [1], [0], [0], [0, 0, 1, 0], [], []>} : vector<8x8xbf16>, vector<8x8xbf16>, vector<8x8xf32> -> vector<8x8xf32>
    %135 = arith.addf %134, %92 : vector<8x8xf32>
    %cst_81 = arith.constant dense<0xFF800000> : vector<8xf32>
    %136 = vector.multi_reduction <maximumf>, %135, %cst_81 [1] : vector<8x8xf32> to vector<8xf32>
    %137 = vector.shape_cast %136 : vector<8xf32> to vector<8x1xf32>
    %138 = vector.broadcast %137 : vector<8x1xf32> to vector<8x8xf32>
    %139 = arith.subf %135, %138 : vector<8x8xf32>
    %140 = math.exp %139 : vector<8x8xf32>
    %cst_82 = arith.constant dense<0.000000e+00> : vector<8xf32>
    %141 = vector.multi_reduction <add>, %140, %cst_82 [1] : vector<8x8xf32> to vector<8xf32>
    %142 = vector.shape_cast %141 : vector<8xf32> to vector<8x1xf32>
    %143 = tpu.reciprocal %142 {approx = true} : vector<8x1xf32> -> vector<8x1xf32>
    %144 = vector.broadcast %143 : vector<8x1xf32> to vector<8x8xf32>
    %145 = arith.mulf %140, %144 : vector<8x8xf32>
    %146 = arith.truncf %145 : vector<8x8xf32> to vector<8x8xbf16>
    %cst_83 = arith.constant dense<0.000000e+00> : vector<8x8xf32>
    %147 = tpu.matmul %146, %133, %cst_83 {dimension_numbers = #tpu.dot_dimension_numbers<[1], [0], [0], [1], [0, 0, 1, 1], [], []>} : vector<8x8xbf16>, vector<8x8xbf16>, vector<8x8xf32> -> vector<8x8xf32>
    %148 = arith.truncf %147 : vector<8x8xf32> to vector<8x8xbf16>
    %c8_84 = arith.constant 8 : index
    %c16_85 = arith.constant 16 : index
    %149 = vector.load %arg9[%c8_84, %c16_85] : memref<16x32xbf16, #tpu.memory_space<vmem>>, vector<8x8xbf16>
    tpu.vector_store %arg9[%c8_84, %c16_85], %148 {strides = array<i32>} : memref<16x32xbf16, #tpu.memory_space<vmem>>, vector<8x8xbf16>,
    %c8_86 = arith.constant 8 : index
    %c24_87 = arith.constant 24 : index
    %150 = vector.load %arg8[%c8_86, %c24_87] : memref<16x96xbf16, #tpu.memory_space<vmem>>, vector<8x8xbf16>
    %c8_88 = arith.constant 8 : index
    %c56_89 = arith.constant 56 : index
    %151 = vector.load %arg8[%c8_88, %c56_89] : memref<16x96xbf16, #tpu.memory_space<vmem>>, vector<8x8xbf16>
    %c8_90 = arith.constant 8 : index
    %c88_91 = arith.constant 88 : index
    %152 = vector.load %arg8[%c8_90, %c88_91] : memref<16x96xbf16, #tpu.memory_space<vmem>>, vector<8x8xbf16>
    %cst_92 = arith.constant dense<0.000000e+00> : vector<8x8xf32>
    %153 = tpu.matmul %150, %151, %cst_92 {dimension_numbers = #tpu.dot_dimension_numbers<[1], [1], [0], [0], [0, 0, 1, 0], [], []>} : vector<8x8xbf16>, vector<8x8xbf16>, vector<8x8xf32> -> vector<8x8xf32>
    %154 = arith.addf %153, %92 : vector<8x8xf32>
    %cst_93 = arith.constant dense<0xFF800000> : vector<8xf32>
    %155 = vector.multi_reduction <maximumf>, %154, %cst_93 [1] : vector<8x8xf32> to vector<8xf32>
    %156 = vector.shape_cast %155 : vector<8xf32> to vector<8x1xf32>
    %157 = vector.broadcast %156 : vector<8x1xf32> to vector<8x8xf32>
    %158 = arith.subf %154, %157 : vector<8x8xf32>
    %159 = math.exp %158 : vector<8x8xf32>
    %cst_94 = arith.constant dense<0.000000e+00> : vector<8xf32>
    %160 = vector.multi_reduction <add>, %159, %cst_94 [1] : vector<8x8xf32> to vector<8xf32>
    %161 = vector.shape_cast %160 : vector<8xf32> to vector<8x1xf32>
    %162 = tpu.reciprocal %161 {approx = true} : vector<8x1xf32> -> vector<8x1xf32>
    %163 = vector.broadcast %162 : vector<8x1xf32> to vector<8x8xf32>
    %164 = arith.mulf %159, %163 : vector<8x8xf32>
    %165 = arith.truncf %164 : vector<8x8xf32> to vector<8x8xbf16>
    %cst_95 = arith.constant dense<0.000000e+00> : vector<8x8xf32>
    %166 = tpu.matmul %165, %152, %cst_95 {dimension_numbers = #tpu.dot_dimension_numbers<[1], [0], [0], [1], [0, 0, 1, 1], [], []>} : vector<8x8xbf16>, vector<8x8xbf16>, vector<8x8xf32> -> vector<8x8xf32>
    %167 = arith.truncf %166 : vector<8x8xf32> to vector<8x8xbf16>
    %c8_96 = arith.constant 8 : index
    %c24_97 = arith.constant 24 : index
    %168 = vector.load %arg9[%c8_96, %c24_97] : memref<16x32xbf16, #tpu.memory_space<vmem>>, vector<8x8xbf16>
    tpu.vector_store %arg9[%c8_96, %c24_97], %167 {strides = array<i32>} : memref<16x32xbf16, #tpu.memory_space<vmem>>, vector<8x8xbf16>,
    %c0_98 = arith.constant 0 : index
    %c0_99 = arith.constant 0 : index
    %169 = vector.load %arg9[%c0_98, %c0_99] : memref<16x32xbf16, #tpu.memory_space<vmem>>, vector<16x32xbf16>
    %c0_100 = arith.constant 0 : index
    %c0_101 = arith.constant 0 : index
    %170 = vector.load %arg5[%c0_100, %c0_101] : memref<32x32xbf16, #tpu.memory_space<vmem>>, vector<32x32xbf16>
    %cst_102 = arith.constant dense<0.000000e+00> : vector<16x32xf32>
    %171 = tpu.matmul %169, %170, %cst_102 {dimension_numbers = #tpu.dot_dimension_numbers<[1], [0], [0], [1], [0, 0, 1, 1], [], []>} : vector<16x32xbf16>, vector<32x32xbf16>, vector<16x32xf32> -> vector<16x32xf32>
    %c0_103 = arith.constant 0 : index
    %c0_104 = arith.constant 0 : index
    %172 = vector.load %arg6[%c0_103, %c0_104] : memref<1x32xf32, #tpu.memory_space<vmem>>, vector<1x32xf32>
    %173 = vector.broadcast %172 : vector<1x32xf32> to vector<16x32xf32>
    %174 = arith.addf %171, %173 : vector<16x32xf32>
    %175 = vector.shape_cast %174 : vector<16x32xf32> to vector<2x8x32xf32>
    %c0_105 = arith.constant 0 : index
    %c0_106 = arith.constant 0 : index
    %c0_107 = arith.constant 0 : index
    %176 = vector.load %arg7[%c0_105, %c0_106, %c0_107] : memref<2x8x32xf32, #tpu.memory_space<vmem>>, vector<2x8x32xf32>
    tpu.vector_store %arg7[%c0_105, %c0_106, %c0_107], %175 {strides = array<i32>} : memref<2x8x32xf32, #tpu.memory_space<vmem>>, vector<2x8x32xf32>,
    return
  }
  func.func @transform_0(%arg0: i32) -> (i32, i32, i32) {
    %c0_i32 = arith.constant 0 : i32
    %c0_i32_0 = arith.constant 0 : i32
    %c0_i32_1 = arith.constant 0 : i32
    return %arg0, %c0_i32, %c0_i32_0 : i32, i32, i32
  }
  func.func @transform_1(%arg0: i32) -> (i32, i32, i32) {
    %c0_i32 = arith.constant 0 : i32
    %c0_i32_0 = arith.constant 0 : i32
    %c0_i32_1 = arith.constant 0 : i32
    return %arg0, %c0_i32, %c0_i32_0 : i32, i32, i32
  }
  func.func @transform_2(%arg0: i32) -> (i32, i32) {
    %c0_i32 = arith.constant 0 : i32
    %c0_i32_0 = arith.constant 0 : i32
    %c0_i32_1 = arith.constant 0 : i32
    return %c0_i32, %c0_i32_0 : i32, i32
  }
  func.func @transform_3(%arg0: i32) -> (i32, i32) {
    %c0_i32 = arith.constant 0 : i32
    %c0_i32_0 = arith.constant 0 : i32
    %c0_i32_1 = arith.constant 0 : i32
    return %c0_i32, %c0_i32_0 : i32, i32
  }
  func.func @transform_4(%arg0: i32) -> (i32, i32) {
    %c0_i32 = arith.constant 0 : i32
    %c0_i32_0 = arith.constant 0 : i32
    %c0_i32_1 = arith.constant 0 : i32
    return %c0_i32, %c0_i32_0 : i32, i32
  }
  func.func @transform_5(%arg0: i32) -> (i32, i32) {
    %c0_i32 = arith.constant 0 : i32
    %c0_i32_0 = arith.constant 0 : i32
    %c0_i32_1 = arith.constant 0 : i32
    return %c0_i32, %c0_i32_0 : i32, i32
  }
  func.func @transform_6(%arg0: i32) -> (i32, i32, i32) {
    %c0_i32 = arith.constant 0 : i32
    %c0_i32_0 = arith.constant 0 : i32
    %c0_i32_1 = arith.constant 0 : i32
    return %arg0, %c0_i32, %c0_i32_0 : i32, i32, i32
  }
}

</mosaic_0001>

<bundles_post_ra>
// kernel: tpu_custom_call.1
= control target key start
LH: loop header
LB: loop body
LE: loop exit
PB: predicated region body
PF: predicated region fallthrough
CT: control target
= control target key end

     0   :  { %11 = vsyncpa [#allocation5], 0  ;;  %s1915_s0 = inlined_call_operand.hbm [shape: bf16[2,8,32], index: 0, kind: input, shape index: {}]   ;;  %s1916_s1 = inlined_call_operand.hbm [shape: f32[2,1,8], index: 1, kind: input, shape index: {}]   ;;  %s1917_s2 = inlined_call_operand.hbm [shape: bf16[32,96], index: 2, kind: input, shape index: {}]   ;;  %s1918_s3 = inlined_call_operand.vmem [shape: f32[1,96], index: 3, kind: input, shape index: {}]   ;;  %s1919_s4 = inlined_call_operand.hbm [shape: bf16[32,32], index: 4, kind: input, shape index: {}]   ;;  %s1920_s5 = inlined_call_operand.vmem [shape: f32[1,32], index: 5, kind: input, shape index: {}]   ;;  %s1921_s6 = inlined_call_operand.hbm [shape: f32[2,8,32], index: 6, kind: output, shape index: {}]  }
   0x1   :  { %12 = vsyncpa [#allocation8], 0 }
   0x2   :  { %13 = vsyncpa [#allocation11], 0 }
   0x3   :  { %14 = vsyncpa [#allocation6], 0  ;;  %s1622_s21 = smov [#allocation7]  }
   0x4   :  { %s32_s22 = sshll.u32 %s1622_s21, 4  ;;  %s33_s22 = int_to_ptr.vmem [resolvable:$true] %s32_s22 }
   0x5   :  { %s1522_s23 = scalar_lea.vmem %s33_s22, 32  ;;  %p1527_p1 = scmp.lt.s32.totalorder %s33_s22, %s33_s22 }
   0x6   :  { %p1523_p0 = scmp.ne.s32.totalorder %s33_s22, %s1522_s23  ;;  %p1528_p2 = scmp.lt.s32.totalorder %s1522_s23, %s1522_s23 }
   0x8   :  { %p1529_p3 = por %p1528_p2, %p1527_p1 }
   0xa   :  { %p1530_p4 = pnand %p1529_p3, %p1523_p0 }
   0xc   :  { %1533 = shalt.err (!%p1530_p4)
}
   0xd   :  { %s1623_s24 = smov 16   ;;  %s1624_s25 = smov 1  }
   0xe   :  { %38 = dma.hbm_to_vmem [thread:$0]  %s1916_s1, 32, %s33_s22, [#allocation8], %s1623_s24, %s1623_s24, %s1624_s25  }
   0xf   :  { %s1625_s28 = smov [#allocation4]  }
  0x10   :  { %s20_s29 = sshll.u32 %s1625_s28, 4  ;;  %s21_s29 = int_to_ptr.vmem [resolvable:$true] %s20_s29 }
  0x11   :  { %s1542_s30 = scalar_lea.vmem %s21_s29, 128  ;;  %p1547_p6 = scmp.lt.s32.totalorder %s21_s29, %s21_s29 }
  0x12   :  { %p1543_p5 = scmp.ne.s32.totalorder %s21_s29, %s1542_s30  ;;  %p1548_p7 = scmp.lt.s32.totalorder %s1542_s30, %s1542_s30 }
  0x14   :  { %p1549_p8 = por %p1548_p7, %p1547_p6 }
  0x16   :  { %p1550_p9 = pnand %p1549_p8, %p1543_p5 }
  0x18   :  { %1553 = shalt.err (!%p1550_p9)
}
  0x19   :  { %s1626_s7 = smov 64   ;;  %s1627_s8 = smov 4  }
  0x1a   :  { %26 = dma.hbm_to_vmem [thread:$0]  %s1915_s0, 128, %s21_s29, [#allocation5], %s1626_s7, %s1626_s7, %s1627_s8  }
  0x1b   :  { %s1628_s11 = smov [#allocation9]   ;;  %s1629_s12 = smov [#allocation10]  }
  0x1c   :  { %s44_s1 = sshll.u32 %s1628_s11, 4  ;;  %s58_s13 = sshll.u32 %s1629_s12, 4  ;;  %s45_s1 = int_to_ptr.vmem [resolvable:$true] %s44_s1  ;;  %s59_s13 = int_to_ptr.vmem [resolvable:$true] %s58_s13 }
  0x1d   :  { %s1562_s14 = scalar_lea.vmem %s45_s1, 256  ;;  %p1567_p11 = scmp.lt.s32.totalorder %s45_s1, %s45_s1 }
  0x1e   :  { %p1563_p10 = scmp.ne.s32.totalorder %s45_s1, %s1562_s14  ;;  %p1568_p12 = scmp.lt.s32.totalorder %s1562_s14, %s1562_s14 }
  0x20   :  { %p1569_p13 = por %p1568_p12, %p1567_p11 }
  0x22   :  { %p1570_p0 = pnand %p1569_p13, %p1563_p10 }
  0x24   :  { %1573 = shalt.err (!%p1570_p0)
}
  0x25   :  { %50 = dma.hbm_to_vmem [thread:$0]  %s1917_s2, 256, %s45_s1, [#allocation8], %s1626_s7, %s1626_s7, %s1627_s8  }
  0x26   :  { %s1582_s0 = scalar_lea.vmem %s59_s13, 256  ;;  %p1587_p2 = scmp.lt.s32.totalorder %s59_s13, %s59_s13 }
  0x27   :  { %p1583_p1 = scmp.ne.s32.totalorder %s59_s13, %s1582_s0  ;;  %p1588_p3 = scmp.lt.s32.totalorder %s1582_s0, %s1582_s0 }
  0x29   :  { %p1589_p4 = por %p1588_p3, %p1587_p2 }
  0x2b   :  { %p1590_p5 = pnand %p1589_p4, %p1583_p1 }
  0x2d   :  { %1593 = shalt.err (!%p1590_p5)
}
  0x2e   :  { %64 = dma.hbm_to_vmem [thread:$0]  %s1919_s4, 256, %s59_s13, [#allocation11], %s1626_s7, %s1626_s7, %s1627_s8  }
  0x2f   :  { %1614 = dma.done.wait [#allocation5], 128  }
  0x30   :  { %1615 = vsyncadd [#allocation5], 4294967168 }
  0x31   :  { %1616 = dma.done.wait [#allocation8], 288  }
  0x32   :  { %1617 = vsyncadd [#allocation8], 4294967008 }
  0x33   :  { %1618 = dma.done.wait [#allocation11], 256  }
  0x34   :  { %1619 = vsyncadd [#allocation11], 4294967040  ;;  %v1630_v0 = vmov 0.0   ;;  %vm1631_vm0 = vmmov 0   ;;  %v1468_v1 = vld [vmem:[#allocation9 + $0x8] sm:$0xff]   ;;  %v1469_v2 = vld [vmem:[#allocation9] sm:$0xff]  }
  0x35   :  { %1332 = vmatprep.subr.bf16.mxu0 %v1630_v0  ;;  %1336 = vmatprep.mubr.msk.bf16.mxu0 %vm1631_vm0, %v1630_v0  ;;  %v1470_v3 = vld [vmem:[#allocation4] sm:$0xff]   ;;  %vm110_vm1 = vcmask 261120   ;;  %v1242_v4 = vld [vmem:[%s1918_s3] ss:$0 sm:$0xff]  ;;  %vm163_vm2 = vcmask 781312   ;;  %s1632_s19 = smov 120  }
  0x36   :  { %1340 = vmatprep.subr.bf16.mxu1 %v1630_v0  ;;  %1342 = vmatprep.mubr.msk.bf16.mxu1 %vm1631_vm0, %v1630_v0  ;;  %s1633_s3 = smov 96   ;;  %s1634_s20 = smov 80   ;;  %vm179_vm3 = vcmask 64512   ;;  %v1249_v45 = vld [vmem:[#allocation7] ss:$0 sm:$0xff]  ;;  %vm243_vm4 = vcmask 1043456  }
  0x37   :  { %1333 = vmatpush3.bf16.msra.mxu0 %v1468_v1  ;;  %s1635_s21 = smov 88   ;;  %s1636_s22 = smov 72   ;;  %vm288_vm5 = vcmask 60416   ;;  %vm411_vm6 = vcmask 126016   ;;  %vm534_vm7 = vcmask 191616   ;;  %vm657_vm8 = vcmask 257216  }
  0x38   :  { %1334 = vmatprep.subr.bf16.mxu0 %v1630_v0  ;;  %s1637_s23 = smov 112   ;;  %s1638_s25 = smov 104  }
  0x39   :  { %s1639_s26 = smov 56   ;;  %s1640_s27 = smov 48  }
  0x3a   :  { %s1641_s28 = smov 40   ;;  %s1642_s29 = smov 8  }
  0x3b   :  { %1335 = vmatpush3.bf16.msra.mxu0 %v1469_v2  ;;  %s1643_s30 = smov 24   ;;  %s1644_s8 = smov [#allocation12]  }
  0x3c   :  { %1346 = vmatprep.subr.bf16.mxu0 %v1630_v0  ;;  %s1228_s9 = sshll.u32 %s1644_s8, 4  ;;  %s1229_s9 = int_to_ptr.vmem [resolvable:$true] %s1228_s9 }
  0x3d   :  { %s1594_s10 = scalar_lea.vmem %s1229_s9, 256  ;;  %p1599_p7 = scmp.lt.s32.totalorder %s1229_s9, %s1229_s9 }
  0x3e   :  { %1337 = vmatmul.mubr.msk.bf16.vlgmr.msra.gmra.mxu0 %vm110_vm1, %v1470_v3  ;;  %p1595_p6 = scmp.ne.s32.totalorder %s1229_s9, %s1594_s10  ;;  %p1600_p8 = scmp.lt.s32.totalorder %s1594_s10, %s1594_s10 }
  0x3f   :  { %1348 = vmatprep.mubr.msk.bf16.mxu0 %vm1631_vm0, %v1630_v0 }
  0x40   :  { %p1601_p9 = por %p1600_p8, %p1599_p7 }
  0x42   :  { %p1602_p10 = pnand %p1601_p9, %p1595_p6 }
  0xfe   :  { %v148_v5 = vpop.f32.mrf.mxu0 }
  0xff   :  { %v149_v6 = vadd.f32 %v1242_v4, %v148_v5 }
 0x100   :  { %v1338_v7 = vpop.f32.mrf.mxu0 }
 0x101   :  { %v1286_v8 = vpack.c.bf16 %v149_v6, %v149_v6  ;;  %v1265_v7 = vld [vmem:[#allocation7 + $0x1] ss:$0 sm:$0xff] }
 0x102   :  { %v151_v9 = vpop.f32.mrf.mxu0 }
 0x103   :  { %164 = vst.msk [vmem:[#allocation2] sm:$0xf] %vm163_vm2, %v1286_v8  ;;  %v152_v10 = vadd.f32 %v1242_v4, %v151_v9 }
 0x104   :  { %v1339_v11 = vpop.f32.mrf.mxu0 }
 0x105   :  { %v1287_v12 = vpack.c.bf16 %v152_v10, %v152_v10 }
 0x107   :  { %165 = vst.msk [vmem:[#allocation2 + $0x4] sm:$0xf] %vm163_vm2, %v1287_v12 }
 0x10a   :  { %v1715_v13 = vld [vmem:[#allocation2] ss:$0 sps:$4 sm:$0xff]  }
 0x10b   :  { %v173_v14 = vld [vmem:[#allocation2] sm:$0xf]  ;;  %294 = vrot.lane.b32.xlu1 %v1715_v13, %s1632_s19 }
 0x10c   :  { %v1717_v15 = vcombine.low %v173_v14, %v173_v14  ;;  %v1721_v16 = vld [vmem:[#allocation2] ss:$0 sps:$4 sm:$0xff]  }
 0x10d   :  { %v1725_v17 = vld [vmem:[#allocation2] ss:$0 sps:$4 sm:$0xff]  }
 0x10e   :  { %177 = vrot.lane.b32.xlu0 %v1717_v15, %s1633_s3  ;;  %v667_v18 = vld [vmem:[#allocation2 + $0x4] sm:$0xf] }
 0x10f   :  { %419 = vrot.lane.b32.xlu1 %v1721_v16, %s1634_s20  ;;  %v1729_v19 = vcombine.low %v667_v18, %v667_v18  ;;  %v1733_v20 = vld [vmem:[#allocation2 + $0x4] ss:$0 sps:$4 sm:$0xff]  }
 0x110   :  { %v1737_v21 = vld [vmem:[#allocation2 + $0x4] ss:$0 sps:$4 sm:$0xff]  }
 0x111   :  { %v1741_v22 = vld [vmem:[#allocation2 + $0x4] ss:$0 sps:$4 sm:$0xff]  }
 0x112   :  { %296 = vrot.lane.b32.xlu0 %v1715_v13, %s1635_s21 }
 0x113   :  { %542 = vrot.lane.b32.xlu1 %v1725_v17, %s1636_s22 }
 0x116   :  { %417 = vrot.lane.b32.xlu0 %v1721_v16, %s1637_s23 }
 0x117   :  { %671 = vrot.lane.b32.xlu1 %v1729_v19, %s1633_s3 }
 0x11a   :  { %540 = vrot.lane.b32.xlu0 %v1725_v17, %s1638_s25 }
 0x11b   :  { %785 = vrot.lane.b32.xlu1 %v1733_v20, %s1632_s19 }
 0x11e   :  { %787 = vrot.lane.b32.xlu0 %v1733_v20, %s1635_s21 }
 0x11f   :  { %907 = vrot.lane.b32.xlu1 %v1737_v21, %s1637_s23 }
 0x122   :  { %909 = vrot.lane.b32.xlu0 %v1737_v21, %s1634_s20 }
 0x123   :  { %1029 = vrot.lane.b32.xlu1 %v1741_v22, %s1638_s25 }
 0x126   :  { %1031 = vrot.lane.b32.xlu0 %v1741_v22, %s1636_s22 }
 0x17d   :  { %v295_v26 = vpop.permute.xlu1 %294 }
 0x180   :  { %v178_v23 = vpop.permute.xlu0 %177 }
 0x181   :  { %v184_v24 = vsel %vm179_vm3, %v178_v23, 0  ;;  %v420_v28 = vpop.permute.xlu1 %419 }
 0x182   :  { %1341 = vmatpush3.bf16.xpose.msra.mxu1 %v184_v24  ;;  %v425_v29 = vsel %vm179_vm3, %v420_v28, 0 }
 0x183   :  { %1352 = vmatprep.subr.bf16.mxu1 %v1630_v0 }
 0x184   :  { %v297_v25 = vpop.permute.xlu0 %296 }
 0x185   :  { %v302_v27 = vsel %vm179_vm3, %v297_v25, 0  ;;  %v543_v30 = vpop.permute.xlu1 %542 }
 0x186   :  { %v548_v32 = vsel %vm179_vm3, %v543_v30, 0 }
 0x188   :  { %v418_v31 = vpop.permute.xlu0 %417 }
 0x189   :  { %1343 = vmatmul.mubr.msk.bf16.vlgmr.msra.gmra.mxu1 %vm179_vm3, %v173_v14  ;;  %v672_v33 = vpop.permute.xlu1 %671 }
 0x18a   :  { %1353 = vmatpush3.bf16.xpose.msra.mxu1 %v302_v27  ;;  %1354 = vmatprep.mubr.msk.bf16.mxu1 %vm1631_vm0, %v1630_v0  ;;  %v677_v35 = vsel %vm179_vm3, %v672_v33, 0 }
 0x18b   :  { %1364 = vmatprep.subr.bf16.mxu1 %v1630_v0 }
 0x18c   :  { %v541_v34 = vpop.permute.xlu0 %540 }
 0x18d   :  { %v786_v39 = vpop.permute.xlu1 %785 }
 0x190   :  { %v788_v36 = vpop.permute.xlu0 %787 }
 0x191   :  { %1355 = vmatmul.mubr.msk.bf16.vlgmr.msra.gmra.mxu1 %vm179_vm3, %v295_v26  ;;  %v793_v37 = vsel %vm179_vm3, %v788_v36, 0  ;;  %v908_v42 = vpop.permute.xlu1 %907 }
 0x192   :  { %1365 = vmatpush3.bf16.xpose.msra.mxu1 %v425_v29  ;;  %1366 = vmatprep.mubr.msk.bf16.mxu1 %vm1631_vm0, %v1630_v0 }
 0x193   :  { %1376 = vmatprep.subr.bf16.mxu1 %v1630_v0 }
 0x194   :  { %v910_v38 = vpop.permute.xlu0 %909 }
 0x195   :  { %v915_v40 = vsel %vm179_vm3, %v910_v38, 0  ;;  %v1030_v44 = vpop.permute.xlu1 %1029 }
 0x198   :  { %v1032_v41 = vpop.permute.xlu0 %1031 }
 0x199   :  { %1367 = vmatmul.mubr.msk.bf16.vlgmr.msra.gmra.mxu1 %vm179_vm3, %v418_v31  ;;  %v1037_v43 = vsel %vm179_vm3, %v1032_v41, 0 }
 0x19a   :  { %1377 = vmatpush3.bf16.xpose.msra.mxu1 %v548_v32  ;;  %1378 = vmatprep.mubr.msk.bf16.mxu1 %vm1631_vm0, %v1630_v0 }
 0x19b   :  { %1388 = vmatprep.subr.bf16.mxu1 %v1630_v0 }
 0x1a1   :  { %1379 = vmatmul.mubr.msk.bf16.vlgmr.msra.gmra.mxu1 %vm179_vm3, %v541_v34 }
 0x1a2   :  { %1389 = vmatpush3.bf16.xpose.msra.mxu1 %v677_v35  ;;  %1390 = vmatprep.mubr.msk.bf16.mxu1 %vm1631_vm0, %v1630_v0 }
 0x1a3   :  { %1400 = vmatprep.subr.bf16.mxu1 %v1630_v0 }
 0x1a9   :  { %1391 = vmatmul.mubr.msk.bf16.vlgmr.msra.gmra.mxu1 %vm179_vm3, %v667_v18 }
 0x1aa   :  { %1401 = vmatpush3.bf16.xpose.msra.mxu1 %v793_v37  ;;  %1402 = vmatprep.mubr.msk.bf16.mxu1 %vm1631_vm0, %v1630_v0 }
 0x1ab   :  { %1412 = vmatprep.subr.bf16.mxu1 %v1630_v0 }
 0x1b1   :  { %1403 = vmatmul.mubr.msk.bf16.vlgmr.msra.gmra.mxu1 %vm179_vm3, %v786_v39 }
 0x1b2   :  { %1413 = vmatpush3.bf16.xpose.msra.mxu1 %v915_v40  ;;  %1414 = vmatprep.mubr.msk.bf16.mxu1 %vm1631_vm0, %v1630_v0 }
 0x1b3   :  { %1424 = vmatprep.subr.bf16.mxu1 %v1630_v0 }
 0x1b9   :  { %1415 = vmatmul.mubr.msk.bf16.vlgmr.msra.gmra.mxu1 %vm179_vm3, %v908_v42 }
 0x1ba   :  { %1425 = vmatpush3.bf16.xpose.msra.mxu1 %v1037_v43  ;;  %1426 = vmatprep.mubr.msk.bf16.mxu1 %vm1631_vm0, %v1630_v0 }
 0x1bb   :  { %1436 = vmatprep.subr.bf16.mxu1 %v1630_v0 }
 0x1c1   :  { %1427 = vmatmul.mubr.msk.bf16.vlgmr.msra.gmra.mxu1 %vm179_vm3, %v1030_v44 }
 0x1c2   :  { %1440 = vmatprep.mubr.msk.bf16.mxu1 %vm1631_vm0, %v1630_v0 }
 0x249   :  { %v220_v46 = vpop.f32.mrf.mxu1 }
 0x24a   :  { %v221_v47 = vadd.f32 %v1249_v45, %v220_v46 }
 0x24b   :  { %v1344_v48 = vpop.f32.mrf.mxu1 }
 0x24c   :  { %v226_v49 = vsel %vm179_vm3, %v221_v47, -inf }
 0x24d   :  { %v223_v50 = vpop.f32.mrf.mxu1  ;;  %227 = vmax.xlane.f32.xlu0 %v226_v49 }
 0x24f   :  { %v1345_v51 = vpop.f32.mrf.mxu1 }
 0x251   :  { %v338_v52 = vpop.f32.mrf.mxu1 }
 0x252   :  { %v339_v53 = vadd.f32 %v1249_v45, %v338_v52 }
 0x253   :  { %v1356_v54 = vpop.f32.mrf.mxu1 }
 0x254   :  { %v344_v55 = vsel %vm179_vm3, %v339_v53, -inf }
 0x255   :  { %v341_v56 = vpop.f32.mrf.mxu1  ;;  %345 = vmax.xlane.f32.xlu1 %v344_v55 }
 0x257   :  { %v1357_v57 = vpop.f32.mrf.mxu1 }
 0x259   :  { %v461_v58 = vpop.f32.mrf.mxu1 }
 0x25a   :  { %v462_v59 = vadd.f32 %v1249_v45, %v461_v58 }
 0x25b   :  { %v1368_v60 = vpop.f32.mrf.mxu1 }
 0x25c   :  { %v467_v61 = vsel %vm179_vm3, %v462_v59, -inf }
 0x25d   :  { %v464_v62 = vpop.f32.mrf.mxu1  ;;  %468 = vmax.xlane.f32.xlu0 %v467_v61 }
 0x25f   :  { %v1369_v63 = vpop.f32.mrf.mxu1 }
 0x261   :  { %v584_v1 = vpop.f32.mrf.mxu1 }
 0x262   :  { %v1788_v2 = vadd.f32 %v1249_v45, %v584_v1 }
 0x263   :  { %v1380_v3 = vpop.f32.mrf.mxu1 }
 0x264   :  { %v590_v4 = vsel %vm179_vm3, %v1788_v2, -inf }
 0x265   :  { %v587_v5 = vpop.f32.mrf.mxu1  ;;  %591 = vmax.xlane.f32.xlu0 %v590_v4 }
 0x267   :  { %v1381_v6 = vpop.f32.mrf.mxu1 }
 0x269   :  { %v713_v8 = vpop.f32.mrf.mxu1 }
 0x26a   :  { %v1792_v9 = vadd.f32 %v1265_v7, %v713_v8 }
 0x26b   :  { %v1392_v10 = vpop.f32.mrf.mxu1 }
 0x26c   :  { %v719_v11 = vsel %vm179_vm3, %v1792_v9, -inf }
 0x26d   :  { %720 = vmax.xlane.f32.xlu1 %v719_v11  ;;  %v716_v12 = vpop.f32.mrf.mxu1 }
 0x26f   :  { %v1393_v14 = vpop.f32.mrf.mxu1 }
 0x271   :  { %v829_v18 = vpop.f32.mrf.mxu1 }
 0x272   :  { %v1796_v23 = vadd.f32 %v1265_v7, %v829_v18 }
 0x273   :  { %v1404_v24 = vpop.f32.mrf.mxu1 }
 0x274   :  { %v835_v25 = vsel %vm179_vm3, %v1796_v23, -inf }
 0x275   :  { %836 = vmax.xlane.f32.xlu0 %v835_v25  ;;  %v832_v26 = vpop.f32.mrf.mxu1 }
 0x277   :  { %v1405_v27 = vpop.f32.mrf.mxu1 }
 0x279   :  { %v951_v28 = vpop.f32.mrf.mxu1 }
 0x27a   :  { %v952_v29 = vadd.f32 %v1265_v7, %v951_v28 }
 0x27b   :  { %v1416_v30 = vpop.f32.mrf.mxu1 }
 0x27c   :  { %v957_v31 = vsel %vm179_vm3, %v952_v29, -inf }
 0x27d   :  { %958 = vmax.xlane.f32.xlu1 %v957_v31  ;;  %v954_v32 = vpop.f32.mrf.mxu1 }
 0x27f   :  { %v1417_v33 = vpop.f32.mrf.mxu1 }
 0x281   :  { %v1073_v34 = vpop.f32.mrf.mxu1 }
 0x282   :  { %v1805_v38 = vadd.f32 %v1265_v7, %v1073_v34 }
 0x283   :  { %v1428_v35 = vpop.f32.mrf.mxu1 }
 0x284   :  { %v1079_v39 = vsel %vm179_vm3, %v1805_v38, -inf }
 0x285   :  { %v1076_v36 = vpop.f32.mrf.mxu1 }
 0x287   :  { %v1429_v37 = vpop.f32.mrf.mxu1 }
 0x28b   :  { %356 = vrot.lane.b32.xlu0 %v1715_v13, %s1639_s26 }
 0x28e   :  { %238 = vrot.lane.b32.xlu1 %v1717_v15, %s1626_s7 }
 0x2aa   :  { %1080 = vmax.xlane.f32.xlu0 %v1079_v39 }
 0x2d6   :  { %v228_v40 = vpop.xlane.xlu0 %227 }
 0x2d7   :  { %v229_v41 = vsub.f32 %v221_v47, %v228_v40 }
 0x2d9   :  { %v230_v42 = vmul.f32 1.442695, %v229_v41 }
 0x2db   :  { %1482 = vpow2.f32 %v230_v42 }
 0x2de   :  { %v346_v43 = vpop.xlane.xlu1 %345 }
 0x2df   :  { %v347_v44 = vsub.f32 %v339_v53, %v346_v43 }
 0x2e1   :  { %v348_v45 = vmul.f32 1.442695, %v347_v44 }
 0x2e3   :  { %1484 = vpow2.f32 %v348_v45 }
 0x2e6   :  { %v469_v46 = vpop.xlane.xlu0 %468 }
 0x2e7   :  { %v470_v48 = vsub.f32 %v462_v59, %v469_v46 }
 0x2e8   :  { %v1809_v13 = vpop.eup %1482 }
 0x2e9   :  { %v471_v49 = vmul.f32 1.442695, %v470_v48  ;;  %v232_v15 = vsel %vm179_vm3, %v1809_v13, 0.0 }
 0x2ea   :  { %233 = vadd.xlane.f32.xlu1 %v232_v15 }
 0x2eb   :  { %1486 = vpow2.f32 %v471_v49 }
 0x2ee   :  { %v592_v56 = vpop.xlane.xlu0 %591 }
 0x2ef   :  { %v593_v58 = vsub.f32 %v1788_v2, %v592_v56 }
 0x2f0   :  { %v1813_v50 = vpop.eup %1484 }
 0x2f1   :  { %v350_v47 = vsel %vm179_vm3, %v1813_v50, 0.0  ;;  %v594_v59 = vmul.f32 1.442695, %v593_v58 }
 0x2f2   :  { %351 = vadd.xlane.f32.xlu0 %v350_v47 }
 0x2f3   :  { %1488 = vpow2.f32 %v594_v59 }
 0x2f6   :  { %v721_v53 = vpop.xlane.xlu1 %720 }
 0x2f7   :  { %v722_v60 = vsub.f32 %v1792_v9, %v721_v53 }
 0x2f8   :  { %v1817_v51 = vpop.eup %1486 }
 0x2f9   :  { %v473_v52 = vsel %vm179_vm3, %v1817_v51, 0.0  ;;  %v723_v62 = vmul.f32 1.442695, %v722_v60 }
 0x2fa   :  { %474 = vadd.xlane.f32.xlu1 %v473_v52 }
 0x2fb   :  { %1490 = vpow2.f32 %v723_v62 }
 0x2fe   :  { %v837_v61 = vpop.xlane.xlu0 %836 }
 0x302   :  { %v357_v10 = vpop.permute.xlu0 %356 }
 0x303   :  { %v362_v28 = vsel %vm243_vm4, %v357_v10, 0 }
 0x306   :  { %v959_v54 = vpop.xlane.xlu1 %958 }
 0x307   :  { %v960_v63 = vsub.f32 %v952_v29, %v959_v54 }
 0x308   :  { %479 = vrot.lane.b32.xlu0 %v1721_v16, %s1640_s27  ;;  %v838_v16 = vsub.f32 %v1796_v23, %v837_v61 }
 0x309   :  { %v961_v3 = vmul.f32 1.442695, %v960_v63 }
 0x30a   :  { %v239_v55 = vpop.permute.xlu1 %238  ;;  %v839_v1 = vmul.f32 1.442695, %v838_v16 }
 0x30b   :  { %v245_v57 = vsel %vm243_vm4, %v239_v55, 0  ;;  %602 = vrot.lane.b32.xlu1 %v1725_v17, %s1641_s28  ;;  %v1489_v17 = vpop.eup %1488 }
 0x30c   :  { %1347 = vmatpush3.bf16.msra.mxu0 %v245_v57  ;;  %1492 = vpow2.f32 %v839_v1  ;;  %v596_v4 = vsel %vm179_vm3, %v1489_v17, 0.0  ;;  %v1831_v5 = vpop.eup %1490 }
 0x30d   :  { %1358 = vmatprep.subr.bf16.mxu0 %v1630_v0  ;;  %1494 = vpow2.f32 %v961_v3  ;;  %v725_v6 = vsel %vm179_vm3, %v1831_v5, 0.0 }
 0x319   :  { %v1833_v2 = vpop.eup %1492 }
 0x31a   :  { %v1837_v7 = vpop.eup %1494  ;;  %v841_v8 = vsel %vm179_vm3, %v1833_v2, 0.0 }
 0x31b   :  { %v963_v9 = vsel %vm179_vm3, %v1837_v7, 0.0 }
 0x327   :  { %597 = vadd.xlane.f32.xlu0 %v596_v4 }
 0x32b   :  { %726 = vadd.xlane.f32.xlu0 %v725_v6 }
 0x32f   :  { %842 = vadd.xlane.f32.xlu1 %v841_v8  ;;  %964 = vadd.xlane.f32.xlu0 %v963_v9 }
 0x333   :  { %v1081_v11 = vpop.xlane.xlu0 %1080 }
 0x334   :  { %v1082_v12 = vsub.f32 %v1805_v38, %v1081_v11 }
 0x336   :  { %v1083_v14 = vmul.f32 1.442695, %v1082_v12 }
 0x338   :  { %1496 = vpow2.f32 %v1083_v14 }
 0x340   :  { %847 = vrot.lane.b32.xlu1 %v1733_v20, %s1639_s26 }
 0x344   :  { %969 = vrot.lane.b32.xlu1 %v1737_v21, %s1640_s27 }
 0x345   :  { %v1848_v18 = vpop.eup %1496 }
 0x346   :  { %v1085_v23 = vsel %vm179_vm3, %v1848_v18, 0.0 }
 0x347   :  { %1086 = vadd.xlane.f32.xlu0 %v1085_v23 }
 0x348   :  { %1091 = vrot.lane.b32.xlu1 %v1741_v22, %s1641_s28 }
 0x35d   :  { %731 = vrot.lane.b32.xlu0 %v1729_v19, %s1626_s7 }
 0x373   :  { %v234_v24 = vpop.xlane.xlu1 %233 }
 0x374   :  { %1498 = vrcp.f32 %v234_v24 }
 0x37b   :  { %v352_v25 = vpop.xlane.xlu0 %351 }
 0x37c   :  { %1500 = vrcp.f32 %v352_v25 }
 0x37f   :  { %v480_v29 = vpop.permute.xlu0 %479 }
 0x380   :  { %v485_v31 = vsel %vm243_vm4, %v480_v29, 0 }
 0x381   :  { %v1499_v20 = vpop.eup %1498 }
 0x382   :  { %v236_v26 = vmul.f32 %v1499_v20, %v1809_v13 }
 0x383   :  { %v475_v21 = vpop.xlane.xlu1 %474 }
 0x384   :  { %1502 = vrcp.f32 %v475_v21  ;;  %v237_v27 = vpack.c.bf16 %v236_v26, %v236_v26 }
 0x386   :  { %1349 = vmatmul.mubr.msk.bf16.vlgmr.msra.gmra.mxu0 %vm179_vm3, %v237_v27 }
 0x387   :  { %1359 = vmatpush3.bf16.msra.mxu0 %v362_v28  ;;  %1360 = vmatprep.mubr.msk.bf16.mxu0 %vm1631_vm0, %v1630_v0  ;;  %v603_v34 = vpop.permute.xlu1 %602 }
 0x388   :  { %1370 = vmatprep.subr.bf16.mxu0 %v1630_v0  ;;  %v608_v36 = vsel %vm243_vm4, %v603_v34, 0  ;;  %v1480_v34 = vld [vmem:[#allocation10] sm:$0xff]  }
 0x389   :  { %v1501_v19 = vpop.eup %1500 }
 0x38a   :  { %v354_v22 = vmul.f32 %v1501_v19, %v1813_v50 }
 0x38c   :  { %v355_v30 = vpack.c.bf16 %v354_v22, %v354_v22 }
 0x38e   :  { %1361 = vmatmul.mubr.msk.bf16.vlgmr.msra.gmra.mxu0 %vm179_vm3, %v355_v30 }
 0x38f   :  { %1371 = vmatpush3.bf16.msra.mxu0 %v485_v31  ;;  %1372 = vmatprep.mubr.msk.bf16.mxu0 %vm1631_vm0, %v1630_v0 }
 0x390   :  { %1382 = vmatprep.subr.bf16.mxu0 %v1630_v0 }
 0x391   :  { %v1503_v32 = vpop.eup %1502 }
 0x392   :  { %v477_v33 = vmul.f32 %v1503_v32, %v1817_v51  ;;  %v1479_v32 = vld [vmem:[#allocation10 + $0x8] sm:$0xff]  }
 0x393   :  { %1437 = vmatpush3.bf16.msra.mxu1 %v1479_v32 }
 0x394   :  { %v478_v35 = vpack.c.bf16 %v477_v33, %v477_v33  ;;  %1438 = vmatprep.subr.bf16.mxu1 %v1630_v0 }
 0x396   :  { %1373 = vmatmul.mubr.msk.bf16.vlgmr.msra.gmra.mxu0 %vm179_vm3, %v478_v35 }
 0x397   :  { %1383 = vmatpush3.bf16.msra.mxu0 %v608_v36  ;;  %1384 = vmatprep.mubr.msk.bf16.mxu0 %vm1631_vm0, %v1630_v0 }
 0x398   :  { %1394 = vmatprep.subr.bf16.mxu0 %v1630_v0  ;;  %1439 = vmatpush3.bf16.msra.mxu1 %v1480_v34 }
 0x3b0   :  { %v598_v37 = vpop.xlane.xlu0 %597 }
 0x3b1   :  { %1504 = vrcp.f32 %v598_v37 }
 0x3b4   :  { %v727_v40 = vpop.xlane.xlu0 %726 }
 0x3b5   :  { %1506 = vrcp.f32 %v727_v40 }
 0x3b8   :  { %v843_v42 = vpop.xlane.xlu1 %842  ;;  %v965_v43 = vpop.xlane.xlu0 %964 }
 0x3b9   :  { %1508 = vrcp.f32 %v843_v42 }
 0x3ba   :  { %1510 = vrcp.f32 %v965_v43 }
 0x3bc   :  { %v848_v49 = vpop.permute.xlu1 %847 }
 0x3bd   :  { %v853_v47 = vsel %vm243_vm4, %v848_v49, 0 }
 0x3be   :  { %v1505_v38 = vpop.eup %1504 }
 0x3bf   :  { %v600_v39 = vmul.f32 %v1505_v38, %v1489_v17 }
 0x3c0   :  { %v970_v52 = vpop.permute.xlu1 %969 }
 0x3c1   :  { %v601_v41 = vpack.c.bf16 %v600_v39, %v600_v39  ;;  %v975_v55 = vsel %vm243_vm4, %v970_v52, 0 }
 0x3c2   :  { %v1507_v44 = vpop.eup %1506 }
 0x3c3   :  { %1385 = vmatmul.mubr.msk.bf16.vlgmr.msra.gmra.mxu0 %vm179_vm3, %v601_v41  ;;  %v729_v46 = vmul.f32 %v1507_v44, %v1831_v5 }
 0x3c4   :  { %1396 = vmatprep.mubr.msk.bf16.mxu0 %vm1631_vm0, %v1630_v0  ;;  %v1092_v57 = vpop.permute.xlu1 %1091 }
 0x3c5   :  { %v730_v15 = vpack.c.bf16 %v729_v46, %v729_v46  ;;  %v1097_v60 = vsel %vm243_vm4, %v1092_v57, 0 }
 0x3c6   :  { %v1509_v50 = vpop.eup %1508 }
 0x3c7   :  { %v845_v51 = vmul.f32 %v1509_v50, %v1833_v2  ;;  %v1511_v54 = vpop.eup %1510 }
 0x3c8   :  { %v967_v56 = vmul.f32 %v1511_v54, %v1837_v7 }
 0x3c9   :  { %v846_v53 = vpack.c.bf16 %v845_v51, %v845_v51 }
 0x3ca   :  { %v968_v58 = vpack.c.bf16 %v967_v56, %v967_v56 }
 0x3d0   :  { %v1087_v45 = vpop.xlane.xlu0 %1086 }
 0x3d1   :  { %1512 = vrcp.f32 %v1087_v45 }
 0x3d4   :  { %v732_v48 = vpop.permute.xlu0 %731 }
 0x3d5   :  { %v737_v13 = vsel %vm243_vm4, %v732_v48, 0 }
 0x3d6   :  { %1395 = vmatpush3.bf16.msra.mxu0 %v737_v13 }
 0x3d7   :  { %1406 = vmatprep.subr.bf16.mxu0 %v1630_v0 }
 0x3d9   :  { %1397 = vmatmul.mubr.msk.bf16.vlgmr.msra.gmra.mxu0 %vm179_vm3, %v730_v15  ;;  %v1281_v15 = vld [vmem:[%s1920_s5] ss:$0 sm:$0xff] }
 0x3da   :  { %1407 = vmatpush3.bf16.msra.mxu0 %v853_v47  ;;  %1408 = vmatprep.mubr.msk.bf16.mxu0 %vm1631_vm0, %v1630_v0 }
 0x3db   :  { %1418 = vmatprep.subr.bf16.mxu0 %v1630_v0 }
 0x3de   :  { %v1513_v59 = vpop.eup %1512 }
 0x3df   :  { %v1089_v61 = vmul.f32 %v1513_v59, %v1848_v18 }
 0x3e1   :  { %1409 = vmatmul.mubr.msk.bf16.vlgmr.msra.gmra.mxu0 %vm179_vm3, %v846_v53  ;;  %v1090_v16 = vpack.c.bf16 %v1089_v61, %v1089_v61 }
 0x3e2   :  { %1419 = vmatpush3.bf16.msra.mxu0 %v975_v55  ;;  %1420 = vmatprep.mubr.msk.bf16.mxu0 %vm1631_vm0, %v1630_v0 }
 0x3e3   :  { %1430 = vmatprep.subr.bf16.mxu0 %v1630_v0 }
 0x3e9   :  { %1421 = vmatmul.mubr.msk.bf16.vlgmr.msra.gmra.mxu0 %vm179_vm3, %v968_v58 }
 0x3ea   :  { %1431 = vmatpush3.bf16.msra.mxu0 %v1097_v60  ;;  %1432 = vmatprep.mubr.msk.bf16.mxu0 %vm1631_vm0, %v1630_v0 }
 0x3f1   :  { %1433 = vmatmul.mubr.msk.bf16.vlgmr.msra.gmra.mxu0 %vm179_vm3, %v1090_v16 }
 0x446   :  { %v281_v62 = vpop.f32.mrf.mxu0 }
 0x447   :  { %v287_v63 = vpack.c.bf16 %v281_v62, %v281_v62 }
 0x448   :  { %v1350_v1 = vpop.f32.mrf.mxu0 }
 0x449   :  { %289 = vst.msk [vmem:[#allocation3] sm:$0xf] %vm288_vm5, %v287_v63 }
 0x44a   :  { %v284_v3 = vpop.f32.mrf.mxu0 }
 0x44c   :  { %v1351_v17 = vpop.f32.mrf.mxu0 }
 0x44e   :  { %v398_v4 = vpop.f32.mrf.mxu0 }
 0x44f   :  { %v1288_v5 = vpack.c.bf16 %v398_v4, %v398_v4 }
 0x450   :  { %v1362_v2 = vpop.f32.mrf.mxu0 }
 0x451   :  { %408 = vrot.lane.b32.xlu1 %v1288_v5, %s1642_s29 }
 0x452   :  { %v401_v6 = vpop.f32.mrf.mxu0 }
 0x454   :  { %v1363_v7 = vpop.f32.mrf.mxu0 }
 0x456   :  { %v521_v8 = vpop.f32.mrf.mxu0 }
 0x457   :  { %v1289_v9 = vpack.c.bf16 %v521_v8, %v521_v8 }
 0x458   :  { %v1374_v10 = vpop.f32.mrf.mxu0 }
 0x459   :  { %531 = vrot.lane.b32.xlu0 %v1289_v9, %s1623_s24 }
 0x45a   :  { %v524_v11 = vpop.f32.mrf.mxu0 }
 0x45c   :  { %v1375_v12 = vpop.f32.mrf.mxu0 }
 0x483   :  { %v644_v14 = vpop.f32.mrf.mxu0 }
 0x484   :  { %v1290_v18 = vpack.c.bf16 %v644_v14, %v644_v14 }
 0x485   :  { %v1386_v23 = vpop.f32.mrf.mxu0 }
 0x486   :  { %654 = vrot.lane.b32.xlu0 %v1290_v18, %s1643_s30 }
 0x487   :  { %v647_v24 = vpop.f32.mrf.mxu0 }
 0x489   :  { %v1387_v25 = vpop.f32.mrf.mxu0 }
 0x499   :  { %v773_v20 = vpop.f32.mrf.mxu0 }
 0x49a   :  { %v779_v26 = vpack.c.bf16 %v773_v20, %v773_v20 }
 0x49b   :  { %v1398_v21 = vpop.f32.mrf.mxu0 }
 0x49c   :  { %780 = vst.msk [vmem:[#allocation3 + $0x4] sm:$0xf] %vm288_vm5, %v779_v26 }
 0x49d   :  { %v776_v27 = vpop.f32.mrf.mxu0 }
 0x49f   :  { %v1399_v28 = vpop.f32.mrf.mxu0 }
 0x4a1   :  { %v889_v19 = vpop.f32.mrf.mxu0 }
 0x4a2   :  { %v1291_v22 = vpack.c.bf16 %v889_v19, %v889_v19 }
 0x4a3   :  { %v1410_v29 = vpop.f32.mrf.mxu0 }
 0x4a4   :  { %899 = vrot.lane.b32.xlu1 %v1291_v22, %s1642_s29 }
 0x4a5   :  { %v892_v30 = vpop.f32.mrf.mxu0 }
 0x4a7   :  { %v1411_v31 = vpop.f32.mrf.mxu0 }
 0x4a9   :  { %v1011_v33 = vpop.f32.mrf.mxu0 }
 0x4aa   :  { %v1292_v35 = vpack.c.bf16 %v1011_v33, %v1011_v33 }
 0x4ab   :  { %v1422_v36 = vpop.f32.mrf.mxu0 }
 0x4ac   :  { %1021 = vrot.lane.b32.xlu1 %v1292_v35, %s1623_s24 }
 0x4ad   :  { %v1014_v37 = vpop.f32.mrf.mxu0 }
 0x4af   :  { %v1423_v38 = vpop.f32.mrf.mxu0 }
 0x4b1   :  { %v1133_v39 = vpop.f32.mrf.mxu0 }
 0x4b2   :  { %v1293_v40 = vpack.c.bf16 %v1133_v39, %v1133_v39 }
 0x4b3   :  { %v1434_v41 = vpop.f32.mrf.mxu0 }
 0x4b4   :  { %1143 = vrot.lane.b32.xlu1 %v1293_v40, %s1643_s30 }
 0x4b5   :  { %v1136_v42 = vpop.f32.mrf.mxu0 }
 0x4b7   :  { %v1435_v43 = vpop.f32.mrf.mxu0 }
 0x4c3   :  { %v409_v44 = vpop.permute.xlu1 %408 }
 0x4c4   :  { %412 = vst.msk [vmem:[#allocation3] sm:$0xf] %vm411_vm6, %v409_v44 }
 0x4cb   :  { %v532_v45 = vpop.permute.xlu0 %531 }
 0x4cc   :  { %535 = vst.msk [vmem:[#allocation3] sm:$0xf] %vm534_vm7, %v532_v45 }
 0x4f8   :  { %v655_v0 = vpop.permute.xlu0 %654 }
 0x4f9   :  { %658 = vst.msk [vmem:[#allocation3] sm:$0xf] %vm657_vm8, %v655_v0 }
 0x516   :  { %v900_v46 = vpop.permute.xlu1 %899 }
 0x517   :  { %902 = vst.msk [vmem:[#allocation3 + $0x4] sm:$0xf] %vm411_vm6, %v900_v46 }
 0x51e   :  { %v1022_v48 = vpop.permute.xlu1 %1021 }
 0x51f   :  { %1024 = vst.msk [vmem:[#allocation3 + $0x4] sm:$0xf] %vm534_vm7, %v1022_v48 }
 0x526   :  { %v1144_v13 = vpop.permute.xlu1 %1143 }
 0x527   :  { %1146 = vst.msk [vmem:[#allocation3 + $0x4] sm:$0xf] %vm657_vm8, %v1144_v13 }
 0x52e   :  { %v1481_v49 = vld [vmem:[#allocation3] sm:$0xff]  }
 0x52f   :  { %1441 = vmatmul.mubr.msk.bf16.vlgmr.msra.gmra.mxu1 %vm110_vm1, %v1481_v49 }
 0x5ef   :  { %v1214_v50 = vpop.f32.mrf.mxu1 }
 0x5f0   :  { %v1215_v47 = vadd.f32 %v1281_v15, %v1214_v50 }
 0x5f1   :  { %v1442_v51 = vpop.f32.mrf.mxu1 }
 0x5f2   :  { %1221 = vst.msk [vmem:[#allocation12] sm:$0xff] %vm110_vm1, %v1215_v47 }
 0x5f3   :  { %v1217_v52 = vpop.f32.mrf.mxu1 }
 0x5f4   :  { %v1218_v53 = vadd.f32 %v1281_v15, %v1217_v52 }
 0x5f5   :  { %v1443_v54 = vpop.f32.mrf.mxu1 }
 0x5f6   :  { %1222 = vst.msk [vmem:[#allocation12 + $0x8] sm:$0xff] %vm110_vm1, %v1218_v53 }
 0x5f7   :  { %1605 = shalt.err (!%p1602_p10)
}
 0x5f8   :  { %s1645_s5 = smov 128  }
 0x5f9   :  { %1234 = dma.vmem_to_hbm [thread:$0]  %s1229_s9, 256, %s1921_s6, [#allocation6], %s1645_s5, %s1645_s5, %s1642_s29  }
 0x5fa   :  { %1620 = dma.done.wait [#allocation6], 256  }
 0x5fb   :  { %1621 = vsyncadd [#allocation6], 4294967040 }
 0x5fc   :  { %1238 = vsyncpa [#allocation5], 1 }
 0x5fd   :  { %1239 = vsyncpa [#allocation8], 1 }
 0x5fe   :  { %1240 = vsyncpa [#allocation11], 1 }
 0x5ff   :  { %1241 = vsyncpa [#allocation6], 1 }

// kernel: tpu_custom_call.1
= control target key start
LH: loop header
LB: loop body
LE: loop exit
PB: predicated region body
PF: predicated region fallthrough
CT: control target
= control target key end

     0   :  { %11 = vsyncpa [#allocation5], 0  ;;  %s1915_s0 = inlined_call_operand.hbm [shape: bf16[2,8,32], index: 0, kind: input, shape index: {}]   ;;  %s1916_s1 = inlined_call_operand.hbm [shape: f32[2,1,8], index: 1, kind: input, shape index: {}]   ;;  %s1917_s2 = inlined_call_operand.hbm [shape: bf16[32,96], index: 2, kind: input, shape index: {}]   ;;  %s1918_s3 = inlined_call_operand.vmem [shape: f32[1,96], index: 3, kind: input, shape index: {}]   ;;  %s1919_s4 = inlined_call_operand.hbm [shape: bf16[32,32], index: 4, kind: input, shape index: {}]   ;;  %s1920_s5 = inlined_call_operand.vmem [shape: f32[1,32], index: 5, kind: input, shape index: {}]   ;;  %s1921_s6 = inlined_call_operand.hbm [shape: f32[2,8,32], index: 6, kind: output, shape index: {}]  }
   0x1   :  { %12 = vsyncpa [#allocation8], 0 }
   0x2   :  { %13 = vsyncpa [#allocation11], 0 }
   0x3   :  { %14 = vsyncpa [#allocation6], 0  ;;  %s1622_s21 = smov [#allocation7]  }
   0x4   :  { %s32_s22 = sshll.u32 %s1622_s21, 4  ;;  %s33_s22 = int_to_ptr.vmem [resolvable:$true] %s32_s22 }
   0x5   :  { %s1522_s23 = scalar_lea.vmem %s33_s22, 32  ;;  %p1527_p1 = scmp.lt.s32.totalorder %s33_s22, %s33_s22 }
   0x6   :  { %p1523_p0 = scmp.ne.s32.totalorder %s33_s22, %s1522_s23  ;;  %p1528_p2 = scmp.lt.s32.totalorder %s1522_s23, %s1522_s23 }
   0x8   :  { %p1529_p3 = por %p1528_p2, %p1527_p1 }
   0xa   :  { %p1530_p4 = pnand %p1529_p3, %p1523_p0 }
   0xc   :  { %1533 = shalt.err (!%p1530_p4)
}
   0xd   :  { %s1623_s24 = smov 16   ;;  %s1624_s25 = smov 1  }
   0xe   :  { %38 = dma.hbm_to_vmem [thread:$0]  %s1916_s1, 32, %s33_s22, [#allocation8], %s1623_s24, %s1623_s24, %s1624_s25  }
   0xf   :  { %s1625_s28 = smov [#allocation4]  }
  0x10   :  { %s20_s29 = sshll.u32 %s1625_s28, 4  ;;  %s21_s29 = int_to_ptr.vmem [resolvable:$true] %s20_s29 }
  0x11   :  { %s1542_s30 = scalar_lea.vmem %s21_s29, 128  ;;  %p1547_p6 = scmp.lt.s32.totalorder %s21_s29, %s21_s29 }
  0x12   :  { %p1543_p5 = scmp.ne.s32.totalorder %s21_s29, %s1542_s30  ;;  %p1548_p7 = scmp.lt.s32.totalorder %s1542_s30, %s1542_s30 }
  0x14   :  { %p1549_p8 = por %p1548_p7, %p1547_p6 }
  0x16   :  { %p1550_p9 = pnand %p1549_p8, %p1543_p5 }
  0x18   :  { %1553 = shalt.err (!%p1550_p9)
}
  0x19   :  { %s1626_s7 = smov 64   ;;  %s1627_s8 = smov 4  }
  0x1a   :  { %26 = dma.hbm_to_vmem [thread:$0]  %s1915_s0, 128, %s21_s29, [#allocation5], %s1626_s7, %s1626_s7, %s1627_s8  }
  0x1b   :  { %s1628_s11 = smov [#allocation9]   ;;  %s1629_s12 = smov [#allocation10]  }
  0x1c   :  { %s44_s1 = sshll.u32 %s1628_s11, 4  ;;  %s58_s13 = sshll.u32 %s1629_s12, 4  ;;  %s45_s1 = int_to_ptr.vmem [resolvable:$true] %s44_s1  ;;  %s59_s13 = int_to_ptr.vmem [resolvable:$true] %s58_s13 }
  0x1d   :  { %s1562_s14 = scalar_lea.vmem %s45_s1, 256  ;;  %p1567_p11 = scmp.lt.s32.totalorder %s45_s1, %s45_s1 }
  0x1e   :  { %p1563_p10 = scmp.ne.s32.totalorder %s45_s1, %s1562_s14  ;;  %p1568_p12 = scmp.lt.s32.totalorder %s1562_s14, %s1562_s14 }
  0x20   :  { %p1569_p13 = por %p1568_p12, %p1567_p11 }
  0x22   :  { %p1570_p0 = pnand %p1569_p13, %p1563_p10 }
  0x24   :  { %1573 = shalt.err (!%p1570_p0)
}
  0x25   :  { %50 = dma.hbm_to_vmem [thread:$0]  %s1917_s2, 256, %s45_s1, [#allocation8], %s1626_s7, %s1626_s7, %s1627_s8  }
  0x26   :  { %s1582_s0 = scalar_lea.vmem %s59_s13, 256  ;;  %p1587_p2 = scmp.lt.s32.totalorder %s59_s13, %s59_s13 }
  0x27   :  { %p1583_p1 = scmp.ne.s32.totalorder %s59_s13, %s1582_s0  ;;  %p1588_p3 = scmp.lt.s32.totalorder %s1582_s0, %s1582_s0 }
  0x29   :  { %p1589_p4 = por %p1588_p3, %p1587_p2 }
  0x2b   :  { %p1590_p5 = pnand %p1589_p4, %p1583_p1 }
  0x2d   :  { %1593 = shalt.err (!%p1590_p5)
}
  0x2e   :  { %64 = dma.hbm_to_vmem [thread:$0]  %s1919_s4, 256, %s59_s13, [#allocation11], %s1626_s7, %s1626_s7, %s1627_s8  }
  0x2f   :  { %1614 = dma.done.wait [#allocation5], 128  }
  0x30   :  { %1615 = vsyncadd [#allocation5], 4294967168 }
  0x31   :  { %1616 = dma.done.wait [#allocation8], 288  }
  0x32   :  { %1617 = vsyncadd [#allocation8], 4294967008 }
  0x33   :  { %1618 = dma.done.wait [#allocation11], 256  }
  0x34   :  { %1619 = vsyncadd [#allocation11], 4294967040  ;;  %v1630_v0 = vmov 0.0   ;;  %vm1631_vm0 = vmmov 0   ;;  %v1468_v1 = vld [vmem:[#allocation9 + $0x8] sm:$0xff]   ;;  %v1469_v2 = vld [vmem:[#allocation9] sm:$0xff]  }
  0x35   :  { %1332 = vmatprep.subr.bf16.mxu0 %v1630_v0  ;;  %1336 = vmatprep.mubr.msk.bf16.mxu0 %vm1631_vm0, %v1630_v0  ;;  %v1470_v3 = vld [vmem:[#allocation4] sm:$0xff]   ;;  %vm110_vm1 = vcmask 261120   ;;  %v1242_v4 = vld [vmem:[%s1918_s3] ss:$0 sm:$0xff]  ;;  %vm163_vm2 = vcmask 781312   ;;  %s1632_s19 = smov 120  }
  0x36   :  { %1340 = vmatprep.subr.bf16.mxu1 %v1630_v0  ;;  %1342 = vmatprep.mubr.msk.bf16.mxu1 %vm1631_vm0, %v1630_v0  ;;  %s1633_s3 = smov 96   ;;  %s1634_s20 = smov 80   ;;  %vm179_vm3 = vcmask 64512   ;;  %v1249_v45 = vld [vmem:[#allocation7] ss:$0 sm:$0xff]  ;;  %vm243_vm4 = vcmask 1043456  }
  0x37   :  { %1333 = vmatpush3.bf16.msra.mxu0 %v1468_v1  ;;  %s1635_s21 = smov 88   ;;  %s1636_s22 = smov 72   ;;  %vm288_vm5 = vcmask 60416   ;;  %vm411_vm6 = vcmask 126016   ;;  %vm534_vm7 = vcmask 191616   ;;  %vm657_vm8 = vcmask 257216  }
  0x38   :  { %1334 = vmatprep.subr.bf16.mxu0 %v1630_v0  ;;  %s1637_s23 = smov 112   ;;  %s1638_s25 = smov 104  }
  0x39   :  { %s1639_s26 = smov 56   ;;  %s1640_s27 = smov 48  }
  0x3a   :  { %s1641_s28 = smov 40   ;;  %s1642_s29 = smov 8  }
  0x3b   :  { %1335 = vmatpush3.bf16.msra.mxu0 %v1469_v2  ;;  %s1643_s30 = smov 24   ;;  %s1644_s8 = smov [#allocation12]  }
  0x3c   :  { %1346 = vmatprep.subr.bf16.mxu0 %v1630_v0  ;;  %s1228_s9 = sshll.u32 %s1644_s8, 4  ;;  %s1229_s9 = int_to_ptr.vmem [resolvable:$true] %s1228_s9 }
  0x3d   :  { %s1594_s10 = scalar_lea.vmem %s1229_s9, 256  ;;  %p1599_p7 = scmp.lt.s32.totalorder %s1229_s9, %s1229_s9 }
  0x3e   :  { %1337 = vmatmul.mubr.msk.bf16.vlgmr.msra.gmra.mxu0 %vm110_vm1, %v1470_v3  ;;  %p1595_p6 = scmp.ne.s32.totalorder %s1229_s9, %s1594_s10  ;;  %p1600_p8 = scmp.lt.s32.totalorder %s1594_s10, %s1594_s10 }
  0x3f   :  { %1348 = vmatprep.mubr.msk.bf16.mxu0 %vm1631_vm0, %v1630_v0 }
  0x40   :  { %p1601_p9 = por %p1600_p8, %p1599_p7 }
  0x42   :  { %p1602_p10 = pnand %p1601_p9, %p1595_p6 }
  0xfe   :  { %v148_v5 = vpop.f32.mrf.mxu0 }
  0xff   :  { %v149_v6 = vadd.f32 %v1242_v4, %v148_v5 }
 0x100   :  { %v1338_v7 = vpop.f32.mrf.mxu0 }
 0x101   :  { %v1286_v8 = vpack.c.bf16 %v149_v6, %v149_v6  ;;  %v1265_v7 = vld [vmem:[#allocation7 + $0x1] ss:$0 sm:$0xff] }
 0x102   :  { %v151_v9 = vpop.f32.mrf.mxu0 }
 0x103   :  { %164 = vst.msk [vmem:[#allocation2] sm:$0xf] %vm163_vm2, %v1286_v8  ;;  %v152_v10 = vadd.f32 %v1242_v4, %v151_v9 }
 0x104   :  { %v1339_v11 = vpop.f32.mrf.mxu0 }
 0x105   :  { %v1287_v12 = vpack.c.bf16 %v152_v10, %v152_v10 }
 0x107   :  { %165 = vst.msk [vmem:[#allocation2 + $0x4] sm:$0xf] %vm163_vm2, %v1287_v12 }
 0x10a   :  { %v1715_v13 = vld [vmem:[#allocation2] ss:$0 sps:$4 sm:$0xff]  }
 0x10b   :  { %v173_v14 = vld [vmem:[#allocation2] sm:$0xf]  ;;  %294 = vrot.lane.b32.xlu1 %v1715_v13, %s1632_s19 }
 0x10c   :  { %v1717_v15 = vcombine.low %v173_v14, %v173_v14  ;;  %v1721_v16 = vld [vmem:[#allocation2] ss:$0 sps:$4 sm:$0xff]  }
 0x10d   :  { %v1725_v17 = vld [vmem:[#allocation2] ss:$0 sps:$4 sm:$0xff]  }
 0x10e   :  { %177 = vrot.lane.b32.xlu0 %v1717_v15, %s1633_s3  ;;  %v667_v18 = vld [vmem:[#allocation2 + $0x4] sm:$0xf] }
 0x10f   :  { %419 = vrot.lane.b32.xlu1 %v1721_v16, %s1634_s20  ;;  %v1729_v19 = vcombine.low %v667_v18, %v667_v18  ;;  %v1733_v20 = vld [vmem:[#allocation2 + $0x4] ss:$0 sps:$4 sm:$0xff]  }
 0x110   :  { %v1737_v21 = vld [vmem:[#allocation2 + $0x4] ss:$0 sps:$4 sm:$0xff]  }
 0x111   :  { %v1741_v22 = vld [vmem:[#allocation2 + $0x4] ss:$0 sps:$4 sm:$0xff]  }
 0x112   :  { %296 = vrot.lane.b32.xlu0 %v1715_v13, %s1635_s21 }
 0x113   :  { %542 = vrot.lane.b32.xlu1 %v1725_v17, %s1636_s22 }
 0x116   :  { %417 = vrot.lane.b32.xlu0 %v1721_v16, %s1637_s23 }
 0x117   :  { %671 = vrot.lane.b32.xlu1 %v1729_v19, %s1633_s3 }
 0x11a   :  { %540 = vrot.lane.b32.xlu0 %v1725_v17, %s1638_s25 }
 0x11b   :  { %785 = vrot.lane.b32.xlu1 %v1733_v20, %s1632_s19 }
 0x11e   :  { %787 = vrot.lane.b32.xlu0 %v1733_v20, %s1635_s21 }
 0x11f   :  { %907 = vrot.lane.b32.xlu1 %v1737_v21, %s1637_s23 }
 0x122   :  { %909 = vrot.lane.b32.xlu0 %v1737_v21, %s1634_s20 }
 0x123   :  { %1029 = vrot.lane.b32.xlu1 %v1741_v22, %s1638_s25 }
 0x126   :  { %1031 = vrot.lane.b32.xlu0 %v1741_v22, %s1636_s22 }
 0x17d   :  { %v295_v26 = vpop.permute.xlu1 %294 }
 0x180   :  { %v178_v23 = vpop.permute.xlu0 %177 }
 0x181   :  { %v184_v24 = vsel %vm179_vm3, %v178_v23, 0  ;;  %v420_v28 = vpop.permute.xlu1 %419 }
 0x182   :  { %1341 = vmatpush3.bf16.xpose.msra.mxu1 %v184_v24  ;;  %v425_v29 = vsel %vm179_vm3, %v420_v28, 0 }
 0x183   :  { %1352 = vmatprep.subr.bf16.mxu1 %v1630_v0 }
 0x184   :  { %v297_v25 = vpop.permute.xlu0 %296 }
 0x185   :  { %v302_v27 = vsel %vm179_vm3, %v297_v25, 0  ;;  %v543_v30 = vpop.permute.xlu1 %542 }
 0x186   :  { %v548_v32 = vsel %vm179_vm3, %v543_v30, 0 }
 0x188   :  { %v418_v31 = vpop.permute.xlu0 %417 }
 0x189   :  { %1343 = vmatmul.mubr.msk.bf16.vlgmr.msra.gmra.mxu1 %vm179_vm3, %v173_v14  ;;  %v672_v33 = vpop.permute.xlu1 %671 }
 0x18a   :  { %1353 = vmatpush3.bf16.xpose.msra.mxu1 %v302_v27  ;;  %1354 = vmatprep.mubr.msk.bf16.mxu1 %vm1631_vm0, %v1630_v0  ;;  %v677_v35 = vsel %vm179_vm3, %v672_v33, 0 }
 0x18b   :  { %1364 = vmatprep.subr.bf16.mxu1 %v1630_v0 }
 0x18c   :  { %v541_v34 = vpop.permute.xlu0 %540 }
 0x18d   :  { %v786_v39 = vpop.permute.xlu1 %785 }
 0x190   :  { %v788_v36 = vpop.permute.xlu0 %787 }
 0x191   :  { %1355 = vmatmul.mubr.msk.bf16.vlgmr.msra.gmra.mxu1 %vm179_vm3, %v295_v26  ;;  %v793_v37 = vsel %vm179_vm3, %v788_v36, 0  ;;  %v908_v42 = vpop.permute.xlu1 %907 }
 0x192   :  { %1365 = vmatpush3.bf16.xpose.msra.mxu1 %v425_v29  ;;  %1366 = vmatprep.mubr.msk.bf16.mxu1 %vm1631_vm0, %v1630_v0 }
 0x193   :  { %1376 = vmatprep.subr.bf16.mxu1 %v1630_v0 }
 0x194   :  { %v910_v38 = vpop.permute.xlu0 %909 }
 0x195   :  { %v915_v40 = vsel %vm179_vm3, %v910_v38, 0  ;;  %v1030_v44 = vpop.permute.xlu1 %1029 }
 0x198   :  { %v1032_v41 = vpop.permute.xlu0 %1031 }
 0x199   :  { %1367 = vmatmul.mubr.msk.bf16.vlgmr.msra.gmra.mxu1 %vm179_vm3, %v418_v31  ;;  %v1037_v43 = vsel %vm179_vm3, %v1032_v41, 0 }
 0x19a   :  { %1377 = vmatpush3.bf16.xpose.msra.mxu1 %v548_v32  ;;  %1378 = vmatprep.mubr.msk.bf16.mxu1 %vm1631_vm0, %v1630_v0 }
 0x19b   :  { %1388 = vmatprep.subr.bf16.mxu1 %v1630_v0 }
 0x1a1   :  { %1379 = vmatmul.mubr.msk.bf16.vlgmr.msra.gmra.mxu1 %vm179_vm3, %v541_v34 }
 0x1a2   :  { %1389 = vmatpush3.bf16.xpose.msra.mxu1 %v677_v35  ;;  %1390 = vmatprep.mubr.msk.bf16.mxu1 %vm1631_vm0, %v1630_v0 }
 0x1a3   :  { %1400 = vmatprep.subr.bf16.mxu1 %v1630_v0 }
 0x1a9   :  { %1391 = vmatmul.mubr.msk.bf16.vlgmr.msra.gmra.mxu1 %vm179_vm3, %v667_v18 }
 0x1aa   :  { %1401 = vmatpush3.bf16.xpose.msra.mxu1 %v793_v37  ;;  %1402 = vmatprep.mubr.msk.bf16.mxu1 %vm1631_vm0, %v1630_v0 }
 0x1ab   :  { %1412 = vmatprep.subr.bf16.mxu1 %v1630_v0 }
 0x1b1   :  { %1403 = vmatmul.mubr.msk.bf16.vlgmr.msra.gmra.mxu1 %vm179_vm3, %v786_v39 }
 0x1b2   :  { %1413 = vmatpush3.bf16.xpose.msra.mxu1 %v915_v40  ;;  %1414 = vmatprep.mubr.msk.bf16.mxu1 %vm1631_vm0, %v1630_v0 }
 0x1b3   :  { %1424 = vmatprep.subr.bf16.mxu1 %v1630_v0 }
 0x1b9   :  { %1415 = vmatmul.mubr.msk.bf16.vlgmr.msra.gmra.mxu1 %vm179_vm3, %v908_v42 }
 0x1ba   :  { %1425 = vmatpush3.bf16.xpose.msra.mxu1 %v1037_v43  ;;  %1426 = vmatprep.mubr.msk.bf16.mxu1 %vm1631_vm0, %v1630_v0 }
 0x1bb   :  { %1436 = vmatprep.subr.bf16.mxu1 %v1630_v0 }
 0x1c1   :  { %1427 = vmatmul.mubr.msk.bf16.vlgmr.msra.gmra.mxu1 %vm179_vm3, %v1030_v44 }
 0x1c2   :  { %1440 = vmatprep.mubr.msk.bf16.mxu1 %vm1631_vm0, %v1630_v0 }
 0x249   :  { %v220_v46 = vpop.f32.mrf.mxu1 }
 0x24a   :  { %v221_v47 = vadd.f32 %v1249_v45, %v220_v46 }
 0x24b   :  { %v1344_v48 = vpop.f32.mrf.mxu1 }
 0x24c   :  { %v226_v49 = vsel %vm179_vm3, %v221_v47, -inf }
 0x24d   :  { %v223_v50 = vpop.f32.mrf.mxu1  ;;  %227 = vmax.xlane.f32.xlu0 %v226_v49 }
 0x24f   :  { %v1345_v51 = vpop.f32.mrf.mxu1 }
 0x251   :  { %v338_v52 = vpop.f32.mrf.mxu1 }
 0x252   :  { %v339_v53 = vadd.f32 %v1249_v45, %v338_v52 }
 0x253   :  { %v1356_v54 = vpop.f32.mrf.mxu1 }
 0x254   :  { %v344_v55 = vsel %vm179_vm3, %v339_v53, -inf }
 0x255   :  { %v341_v56 = vpop.f32.mrf.mxu1  ;;  %345 = vmax.xlane.f32.xlu1 %v344_v55 }
 0x257   :  { %v1357_v57 = vpop.f32.mrf.mxu1 }
 0x259   :  { %v461_v58 = vpop.f32.mrf.mxu1 }
 0x25a   :  { %v462_v59 = vadd.f32 %v1249_v45, %v461_v58 }
 0x25b   :  { %v1368_v60 = vpop.f32.mrf.mxu1 }
 0x25c   :  { %v467_v61 = vsel %vm179_vm3, %v462_v59, -inf }
 0x25d   :  { %v464_v62 = vpop.f32.mrf.mxu1  ;;  %468 = vmax.xlane.f32.xlu0 %v467_v61 }
 0x25f   :  { %v1369_v63 = vpop.f32.mrf.mxu1 }
 0x261   :  { %v584_v1 = vpop.f32.mrf.mxu1 }
 0x262   :  { %v1788_v2 = vadd.f32 %v1249_v45, %v584_v1 }
 0x263   :  { %v1380_v3 = vpop.f32.mrf.mxu1 }
 0x264   :  { %v590_v4 = vsel %vm179_vm3, %v1788_v2, -inf }
 0x265   :  { %v587_v5 = vpop.f32.mrf.mxu1  ;;  %591 = vmax.xlane.f32.xlu0 %v590_v4 }
 0x267   :  { %v1381_v6 = vpop.f32.mrf.mxu1 }
 0x269   :  { %v713_v8 = vpop.f32.mrf.mxu1 }
 0x26a   :  { %v1792_v9 = vadd.f32 %v1265_v7, %v713_v8 }
 0x26b   :  { %v1392_v10 = vpop.f32.mrf.mxu1 }
 0x26c   :  { %v719_v11 = vsel %vm179_vm3, %v1792_v9, -inf }
 0x26d   :  { %720 = vmax.xlane.f32.xlu1 %v719_v11  ;;  %v716_v12 = vpop.f32.mrf.mxu1 }
 0x26f   :  { %v1393_v14 = vpop.f32.mrf.mxu1 }
 0x271   :  { %v829_v18 = vpop.f32.mrf.mxu1 }
 0x272   :  { %v1796_v23 = vadd.f32 %v1265_v7, %v829_v18 }
 0x273   :  { %v1404_v24 = vpop.f32.mrf.mxu1 }
 0x274   :  { %v835_v25 = vsel %vm179_vm3, %v1796_v23, -inf }
 0x275   :  { %836 = vmax.xlane.f32.xlu0 %v835_v25  ;;  %v832_v26 = vpop.f32.mrf.mxu1 }
 0x277   :  { %v1405_v27 = vpop.f32.mrf.mxu1 }
 0x279   :  { %v951_v28 = vpop.f32.mrf.mxu1 }
 0x27a   :  { %v952_v29 = vadd.f32 %v1265_v7, %v951_v28 }
 0x27b   :  { %v1416_v30 = vpop.f32.mrf.mxu1 }
 0x27c   :  { %v957_v31 = vsel %vm179_vm3, %v952_v29, -inf }
 0x27d   :  { %958 = vmax.xlane.f32.xlu1 %v957_v31  ;;  %v954_v32 = vpop.f32.mrf.mxu1 }
 0x27f   :  { %v1417_v33 = vpop.f32.mrf.mxu1 }
 0x281   :  { %v1073_v34 = vpop.f32.mrf.mxu1 }
 0x282   :  { %v1805_v38 = vadd.f32 %v1265_v7, %v1073_v34 }
 0x283   :  { %v1428_v35 = vpop.f32.mrf.mxu1 }
 0x284   :  { %v1079_v39 = vsel %vm179_vm3, %v1805_v38, -inf }
 0x285   :  { %v1076_v36 = vpop.f32.mrf.mxu1 }
 0x287   :  { %v1429_v37 = vpop.f32.mrf.mxu1 }
 0x28b   :  { %356 = vrot.lane.b32.xlu0 %v1715_v13, %s1639_s26 }
 0x28e   :  { %238 = vrot.lane.b32.xlu1 %v1717_v15, %s1626_s7 }
 0x2aa   :  { %1080 = vmax.xlane.f32.xlu0 %v1079_v39 }
 0x2d6   :  { %v228_v40 = vpop.xlane.xlu0 %227 }
 0x2d7   :  { %v229_v41 = vsub.f32 %v221_v47, %v228_v40 }
 0x2d9   :  { %v230_v42 = vmul.f32 1.442695, %v229_v41 }
 0x2db   :  { %1482 = vpow2.f32 %v230_v42 }
 0x2de   :  { %v346_v43 = vpop.xlane.xlu1 %345 }
 0x2df   :  { %v347_v44 = vsub.f32 %v339_v53, %v346_v43 }
 0x2e1   :  { %v348_v45 = vmul.f32 1.442695, %v347_v44 }
 0x2e3   :  { %1484 = vpow2.f32 %v348_v45 }
 0x2e6   :  { %v469_v46 = vpop.xlane.xlu0 %468 }
 0x2e7   :  { %v470_v48 = vsub.f32 %v462_v59, %v469_v46 }
 0x2e8   :  { %v1809_v13 = vpop.eup %1482 }
 0x2e9   :  { %v471_v49 = vmul.f32 1.442695, %v470_v48  ;;  %v232_v15 = vsel %vm179_vm3, %v1809_v13, 0.0 }
 0x2ea   :  { %233 = vadd.xlane.f32.xlu1 %v232_v15 }
 0x2eb   :  { %1486 = vpow2.f32 %v471_v49 }
 0x2ee   :  { %v592_v56 = vpop.xlane.xlu0 %591 }
 0x2ef   :  { %v593_v58 = vsub.f32 %v1788_v2, %v592_v56 }
 0x2f0   :  { %v1813_v50 = vpop.eup %1484 }
 0x2f1   :  { %v350_v47 = vsel %vm179_vm3, %v1813_v50, 0.0  ;;  %v594_v59 = vmul.f32 1.442695, %v593_v58 }
 0x2f2   :  { %351 = vadd.xlane.f32.xlu0 %v350_v47 }
 0x2f3   :  { %1488 = vpow2.f32 %v594_v59 }
 0x2f6   :  { %v721_v53 = vpop.xlane.xlu1 %720 }
 0x2f7   :  { %v722_v60 = vsub.f32 %v1792_v9, %v721_v53 }
 0x2f8   :  { %v1817_v51 = vpop.eup %1486 }
 0x2f9   :  { %v473_v52 = vsel %vm179_vm3, %v1817_v51, 0.0  ;;  %v723_v62 = vmul.f32 1.442695, %v722_v60 }
 0x2fa   :  { %474 = vadd.xlane.f32.xlu1 %v473_v52 }
 0x2fb   :  { %1490 = vpow2.f32 %v723_v62 }
 0x2fe   :  { %v837_v61 = vpop.xlane.xlu0 %836 }
 0x302   :  { %v357_v10 = vpop.permute.xlu0 %356 }
 0x303   :  { %v362_v28 = vsel %vm243_vm4, %v357_v10, 0 }
 0x306   :  { %v959_v54 = vpop.xlane.xlu1 %958 }
 0x307   :  { %v960_v63 = vsub.f32 %v952_v29, %v959_v54 }
 0x308   :  { %479 = vrot.lane.b32.xlu0 %v1721_v16, %s1640_s27  ;;  %v838_v16 = vsub.f32 %v1796_v23, %v837_v61 }
 0x309   :  { %v961_v3 = vmul.f32 1.442695, %v960_v63 }
 0x30a   :  { %v239_v55 = vpop.permute.xlu1 %238  ;;  %v839_v1 = vmul.f32 1.442695, %v838_v16 }
 0x30b   :  { %v245_v57 = vsel %vm243_vm4, %v239_v55, 0  ;;  %602 = vrot.lane.b32.xlu1 %v1725_v17, %s1641_s28  ;;  %v1489_v17 = vpop.eup %1488 }
 0x30c   :  { %1347 = vmatpush3.bf16.msra.mxu0 %v245_v57  ;;  %1492 = vpow2.f32 %v839_v1  ;;  %v596_v4 = vsel %vm179_vm3, %v1489_v17, 0.0  ;;  %v1831_v5 = vpop.eup %1490 }
 0x30d   :  { %1358 = vmatprep.subr.bf16.mxu0 %v1630_v0  ;;  %1494 = vpow2.f32 %v961_v3  ;;  %v725_v6 = vsel %vm179_vm3, %v1831_v5, 0.0 }
 0x319   :  { %v1833_v2 = vpop.eup %1492 }
 0x31a   :  { %v1837_v7 = vpop.eup %1494  ;;  %v841_v8 = vsel %vm179_vm3, %v1833_v2, 0.0 }
 0x31b   :  { %v963_v9 = vsel %vm179_vm3, %v1837_v7, 0.0 }
 0x327   :  { %597 = vadd.xlane.f32.xlu0 %v596_v4 }
 0x32b   :  { %726 = vadd.xlane.f32.xlu0 %v725_v6 }
 0x32f   :  { %842 = vadd.xlane.f32.xlu1 %v841_v8  ;;  %964 = vadd.xlane.f32.xlu0 %v963_v9 }
 0x333   :  { %v1081_v11 = vpop.xlane.xlu0 %1080 }
 0x334   :  { %v1082_v12 = vsub.f32 %v1805_v38, %v1081_v11 }
 0x336   :  { %v1083_v14 = vmul.f32 1.442695, %v1082_v12 }
 0x338   :  { %1496 = vpow2.f32 %v1083_v14 }
 0x340   :  { %847 = vrot.lane.b32.xlu1 %v1733_v20, %s1639_s26 }
 0x344   :  { %969 = vrot.lane.b32.xlu1 %v1737_v21, %s1640_s27 }
 0x345   :  { %v1848_v18 = vpop.eup %1496 }
 0x346   :  { %v1085_v23 = vsel %vm179_vm3, %v1848_v18, 0.0 }
 0x347   :  { %1086 = vadd.xlane.f32.xlu0 %v1085_v23 }
 0x348   :  { %1091 = vrot.lane.b32.xlu1 %v1741_v22, %s1641_s28 }
 0x35d   :  { %731 = vrot.lane.b32.xlu0 %v1729_v19, %s1626_s7 }
 0x373   :  { %v234_v24 = vpop.xlane.xlu1 %233 }
 0x374   :  { %1498 = vrcp.f32 %v234_v24 }
 0x37b   :  { %v352_v25 = vpop.xlane.xlu0 %351 }
 0x37c   :  { %1500 = vrcp.f32 %v352_v25 }
 0x37f   :  { %v480_v29 = vpop.permute.xlu0 %479 }
 0x380   :  { %v485_v31 = vsel %vm243_vm4, %v480_v29, 0 }
 0x381   :  { %v1499_v20 = vpop.eup %1498 }
 0x382   :  { %v236_v26 = vmul.f32 %v1499_v20, %v1809_v13 }
 0x383   :  { %v475_v21 = vpop.xlane.xlu1 %474 }
 0x384   :  { %1502 = vrcp.f32 %v475_v21  ;;  %v237_v27 = vpack.c.bf16 %v236_v26, %v236_v26 }
 0x386   :  { %1349 = vmatmul.mubr.msk.bf16.vlgmr.msra.gmra.mxu0 %vm179_vm3, %v237_v27 }
 0x387   :  { %1359 = vmatpush3.bf16.msra.mxu0 %v362_v28  ;;  %1360 = vmatprep.mubr.msk.bf16.mxu0 %vm1631_vm0, %v1630_v0  ;;  %v603_v34 = vpop.permute.xlu1 %602 }
 0x388   :  { %1370 = vmatprep.subr.bf16.mxu0 %v1630_v0  ;;  %v608_v36 = vsel %vm243_vm4, %v603_v34, 0  ;;  %v1480_v34 = vld [vmem:[#allocation10] sm:$0xff]  }
 0x389   :  { %v1501_v19 = vpop.eup %1500 }
 0x38a   :  { %v354_v22 = vmul.f32 %v1501_v19, %v1813_v50 }
 0x38c   :  { %v355_v30 = vpack.c.bf16 %v354_v22, %v354_v22 }
 0x38e   :  { %1361 = vmatmul.mubr.msk.bf16.vlgmr.msra.gmra.mxu0 %vm179_vm3, %v355_v30 }
 0x38f   :  { %1371 = vmatpush3.bf16.msra.mxu0 %v485_v31  ;;  %1372 = vmatprep.mubr.msk.bf16.mxu0 %vm1631_vm0, %v1630_v0 }
 0x390   :  { %1382 = vmatprep.subr.bf16.mxu0 %v1630_v0 }
 0x391   :  { %v1503_v32 = vpop.eup %1502 }
 0x392   :  { %v477_v33 = vmul.f32 %v1503_v32, %v1817_v51  ;;  %v1479_v32 = vld [vmem:[#allocation10 + $0x8] sm:$0xff]  }
 0x393   :  { %1437 = vmatpush3.bf16.msra.mxu1 %v1479_v32 }
 0x394   :  { %v478_v35 = vpack.c.bf16 %v477_v33, %v477_v33  ;;  %1438 = vmatprep.subr.bf16.mxu1 %v1630_v0 }
 0x396   :  { %1373 = vmatmul.mubr.msk.bf16.vlgmr.msra.gmra.mxu0 %vm179_vm3, %v478_v35 }
 0x397   :  { %1383 = vmatpush3.bf16.msra.mxu0 %v608_v36  ;;  %1384 = vmatprep.mubr.msk.bf16.mxu0 %vm1631_vm0, %v1630_v0 }
 0x398   :  { %1394 = vmatprep.subr.bf16.mxu0 %v1630_v0  ;;  %1439 = vmatpush3.bf16.msra.mxu1 %v1480_v34 }
 0x3b0   :  { %v598_v37 = vpop.xlane.xlu0 %597 }
 0x3b1   :  { %1504 = vrcp.f32 %v598_v37 }
 0x3b4   :  { %v727_v40 = vpop.xlane.xlu0 %726 }
 0x3b5   :  { %1506 = vrcp.f32 %v727_v40 }
 0x3b8   :  { %v843_v42 = vpop.xlane.xlu1 %842  ;;  %v965_v43 = vpop.xlane.xlu0 %964 }
 0x3b9   :  { %1508 = vrcp.f32 %v843_v42 }
 0x3ba   :  { %1510 = vrcp.f32 %v965_v43 }
 0x3bc   :  { %v848_v49 = vpop.permute.xlu1 %847 }
 0x3bd   :  { %v853_v47 = vsel %vm243_vm4, %v848_v49, 0 }
 0x3be   :  { %v1505_v38 = vpop.eup %1504 }
 0x3bf   :  { %v600_v39 = vmul.f32 %v1505_v38, %v1489_v17 }
 0x3c0   :  { %v970_v52 = vpop.permute.xlu1 %969 }
 0x3c1   :  { %v601_v41 = vpack.c.bf16 %v600_v39, %v600_v39  ;;  %v975_v55 = vsel %vm243_vm4, %v970_v52, 0 }
 0x3c2   :  { %v1507_v44 = vpop.eup %1506 }
 0x3c3   :  { %1385 = vmatmul.mubr.msk.bf16.vlgmr.msra.gmra.mxu0 %vm179_vm3, %v601_v41  ;;  %v729_v46 = vmul.f32 %v1507_v44, %v1831_v5 }
 0x3c4   :  { %1396 = vmatprep.mubr.msk.bf16.mxu0 %vm1631_vm0, %v1630_v0  ;;  %v1092_v57 = vpop.permute.xlu1 %1091 }
 0x3c5   :  { %v730_v15 = vpack.c.bf16 %v729_v46, %v729_v46  ;;  %v1097_v60 = vsel %vm243_vm4, %v1092_v57, 0 }
 0x3c6   :  { %v1509_v50 = vpop.eup %1508 }
 0x3c7   :  { %v845_v51 = vmul.f32 %v1509_v50, %v1833_v2  ;;  %v1511_v54 = vpop.eup %1510 }
 0x3c8   :  { %v967_v56 = vmul.f32 %v1511_v54, %v1837_v7 }
 0x3c9   :  { %v846_v53 = vpack.c.bf16 %v845_v51, %v845_v51 }
 0x3ca   :  { %v968_v58 = vpack.c.bf16 %v967_v56, %v967_v56 }
 0x3d0   :  { %v1087_v45 = vpop.xlane.xlu0 %1086 }
 0x3d1   :  { %1512 = vrcp.f32 %v1087_v45 }
 0x3d4   :  { %v732_v48 = vpop.permute.xlu0 %731 }
 0x3d5   :  { %v737_v13 = vsel %vm243_vm4, %v732_v48, 0 }
 0x3d6   :  { %1395 = vmatpush3.bf16.msra.mxu0 %v737_v13 }
 0x3d7   :  { %1406 = vmatprep.subr.bf16.mxu0 %v1630_v0 }
 0x3d9   :  { %1397 = vmatmul.mubr.msk.bf16.vlgmr.msra.gmra.mxu0 %vm179_vm3, %v730_v15  ;;  %v1281_v15 = vld [vmem:[%s1920_s5] ss:$0 sm:$0xff] }
 0x3da   :  { %1407 = vmatpush3.bf16.msra.mxu0 %v853_v47  ;;  %1408 = vmatprep.mubr.msk.bf16.mxu0 %vm1631_vm0, %v1630_v0 }
 0x3db   :  { %1418 = vmatprep.subr.bf16.mxu0 %v1630_v0 }
 0x3de   :  { %v1513_v59 = vpop.eup %1512 }
 0x3df   :  { %v1089_v61 = vmul.f32 %v1513_v59, %v1848_v18 }
 0x3e1   :  { %1409 = vmatmul.mubr.msk.bf16.vlgmr.msra.gmra.mxu0 %vm179_vm3, %v846_v53  ;;  %v1090_v16 = vpack.c.bf16 %v1089_v61, %v1089_v61 }
 0x3e2   :  { %1419 = vmatpush3.bf16.msra.mxu0 %v975_v55  ;;  %1420 = vmatprep.mubr.msk.bf16.mxu0 %vm1631_vm0, %v1630_v0 }
 0x3e3   :  { %1430 = vmatprep.subr.bf16.mxu0 %v1630_v0 }
 0x3e9   :  { %1421 = vmatmul.mubr.msk.bf16.vlgmr.msra.gmra.mxu0 %vm179_vm3, %v968_v58 }
 0x3ea   :  { %1431 = vmatpush3.bf16.msra.mxu0 %v1097_v60  ;;  %1432 = vmatprep.mubr.msk.bf16.mxu0 %vm1631_vm0, %v1630_v0 }
 0x3f1   :  { %1433 = vmatmul.mubr.msk.bf16.vlgmr.msra.gmra.mxu0 %vm179_vm3, %v1090_v16 }
 0x446   :  { %v281_v62 = vpop.f32.mrf.mxu0 }
 0x447   :  { %v287_v63 = vpack.c.bf16 %v281_v62, %v281_v62 }
 0x448   :  { %v1350_v1 = vpop.f32.mrf.mxu0 }
 0x449   :  { %289 = vst.msk [vmem:[#allocation3] sm:$0xf] %vm288_vm5, %v287_v63 }
 0x44a   :  { %v284_v3 = vpop.f32.mrf.mxu0 }
 0x44c   :  { %v1351_v17 = vpop.f32.mrf.mxu0 }
 0x44e   :  { %v398_v4 = vpop.f32.mrf.mxu0 }
 0x44f   :  { %v1288_v5 = vpack.c.bf16 %v398_v4, %v398_v4 }
 0x450   :  { %v1362_v2 = vpop.f32.mrf.mxu0 }
 0x451   :  { %408 = vrot.lane.b32.xlu1 %v1288_v5, %s1642_s29 }
 0x452   :  { %v401_v6 = vpop.f32.mrf.mxu0 }
 0x454   :  { %v1363_v7 = vpop.f32.mrf.mxu0 }
 0x456   :  { %v521_v8 = vpop.f32.mrf.mxu0 }
 0x457   :  { %v1289_v9 = vpack.c.bf16 %v521_v8, %v521_v8 }
 0x458   :  { %v1374_v10 = vpop.f32.mrf.mxu0 }
 0x459   :  { %531 = vrot.lane.b32.xlu0 %v1289_v9, %s1623_s24 }
 0x45a   :  { %v524_v11 = vpop.f32.mrf.mxu0 }
 0x45c   :  { %v1375_v12 = vpop.f32.mrf.mxu0 }
 0x483   :  { %v644_v14 = vpop.f32.mrf.mxu0 }
 0x484   :  { %v1290_v18 = vpack.c.bf16 %v644_v14, %v644_v14 }
 0x485   :  { %v1386_v23 = vpop.f32.mrf.mxu0 }
 0x486   :  { %654 = vrot.lane.b32.xlu0 %v1290_v18, %s1643_s30 }
 0x487   :  { %v647_v24 = vpop.f32.mrf.mxu0 }
 0x489   :  { %v1387_v25 = vpop.f32.mrf.mxu0 }
 0x499   :  { %v773_v20 = vpop.f32.mrf.mxu0 }
 0x49a   :  { %v779_v26 = vpack.c.bf16 %v773_v20, %v773_v20 }
 0x49b   :  { %v1398_v21 = vpop.f32.mrf.mxu0 }
 0x49c   :  { %780 = vst.msk [vmem:[#allocation3 + $0x4] sm:$0xf] %vm288_vm5, %v779_v26 }
 0x49d   :  { %v776_v27 = vpop.f32.mrf.mxu0 }
 0x49f   :  { %v1399_v28 = vpop.f32.mrf.mxu0 }
 0x4a1   :  { %v889_v19 = vpop.f32.mrf.mxu0 }
 0x4a2   :  { %v1291_v22 = vpack.c.bf16 %v889_v19, %v889_v19 }
 0x4a3   :  { %v1410_v29 = vpop.f32.mrf.mxu0 }
 0x4a4   :  { %899 = vrot.lane.b32.xlu1 %v1291_v22, %s1642_s29 }
 0x4a5   :  { %v892_v30 = vpop.f32.mrf.mxu0 }
 0x4a7   :  { %v1411_v31 = vpop.f32.mrf.mxu0 }
 0x4a9   :  { %v1011_v33 = vpop.f32.mrf.mxu0 }
 0x4aa   :  { %v1292_v35 = vpack.c.bf16 %v1011_v33, %v1011_v33 }
 0x4ab   :  { %v1422_v36 = vpop.f32.mrf.mxu0 }
 0x4ac   :  { %1021 = vrot.lane.b32.xlu1 %v1292_v35, %s1623_s24 }
 0x4ad   :  { %v1014_v37 = vpop.f32.mrf.mxu0 }
 0x4af   :  { %v1423_v38 = vpop.f32.mrf.mxu0 }
 0x4b1   :  { %v1133_v39 = vpop.f32.mrf.mxu0 }
 0x4b2   :  { %v1293_v40 = vpack.c.bf16 %v1133_v39, %v1133_v39 }
 0x4b3   :  { %v1434_v41 = vpop.f32.mrf.mxu0 }
 0x4b4   :  { %1143 = vrot.lane.b32.xlu1 %v1293_v40, %s1643_s30 }
 0x4b5   :  { %v1136_v42 = vpop.f32.mrf.mxu0 }
 0x4b7   :  { %v1435_v43 = vpop.f32.mrf.mxu0 }
 0x4c3   :  { %v409_v44 = vpop.permute.xlu1 %408 }
 0x4c4   :  { %412 = vst.msk [vmem:[#allocation3] sm:$0xf] %vm411_vm6, %v409_v44 }
 0x4cb   :  { %v532_v45 = vpop.permute.xlu0 %531 }
 0x4cc   :  { %535 = vst.msk [vmem:[#allocation3] sm:$0xf] %vm534_vm7, %v532_v45 }
 0x4f8   :  { %v655_v0 = vpop.permute.xlu0 %654 }
 0x4f9   :  { %658 = vst.msk [vmem:[#allocation3] sm:$0xf] %vm657_vm8, %v655_v0 }
 0x516   :  { %v900_v46 = vpop.permute.xlu1 %899 }
 0x517   :  { %902 = vst.msk [vmem:[#allocation3 + $0x4] sm:$0xf] %vm411_vm6, %v900_v46 }
 0x51e   :  { %v1022_v48 = vpop.permute.xlu1 %1021 }
 0x51f   :  { %1024 = vst.msk [vmem:[#allocation3 + $0x4] sm:$0xf] %vm534_vm7, %v1022_v48 }
 0x526   :  { %v1144_v13 = vpop.permute.xlu1 %1143 }
 0x527   :  { %1146 = vst.msk [vmem:[#allocation3 + $0x4] sm:$0xf] %vm657_vm8, %v1144_v13 }
 0x52e   :  { %v1481_v49 = vld [vmem:[#allocation3] sm:$0xff]  }
 0x52f   :  { %1441 = vmatmul.mubr.msk.bf16.vlgmr.msra.gmra.mxu1 %vm110_vm1, %v1481_v49 }
 0x5ef   :  { %v1214_v50 = vpop.f32.mrf.mxu1 }
 0x5f0   :  { %v1215_v47 = vadd.f32 %v1281_v15, %v1214_v50 }
 0x5f1   :  { %v1442_v51 = vpop.f32.mrf.mxu1 }
 0x5f2   :  { %1221 = vst.msk [vmem:[#allocation12] sm:$0xff] %vm110_vm1, %v1215_v47 }
 0x5f3   :  { %v1217_v52 = vpop.f32.mrf.mxu1 }
 0x5f4   :  { %v1218_v53 = vadd.f32 %v1281_v15, %v1217_v52 }
 0x5f5   :  { %v1443_v54 = vpop.f32.mrf.mxu1 }
 0x5f6   :  { %1222 = vst.msk [vmem:[#allocation12 + $0x8] sm:$0xff] %vm110_vm1, %v1218_v53 }
 0x5f7   :  { %1605 = shalt.err (!%p1602_p10)
}
 0x5f8   :  { %s1645_s5 = smov 128  }
 0x5f9   :  { %1234 = dma.vmem_to_hbm [thread:$0]  %s1229_s9, 256, %s1921_s6, [#allocation6], %s1645_s5, %s1645_s5, %s1642_s29  }
 0x5fa   :  { %1620 = dma.done.wait [#allocation6], 256  }
 0x5fb   :  { %1621 = vsyncadd [#allocation6], 4294967040 }
 0x5fc   :  { %1238 = vsyncpa [#allocation5], 1 }
 0x5fd   :  { %1239 = vsyncpa [#allocation8], 1 }
 0x5fe   :  { %1240 = vsyncpa [#allocation11], 1 }
 0x5ff   :  { %1241 = vsyncpa [#allocation6], 1 }

</bundles_post_ra>
